<compile_context>
chip_gen: v5e
topology: v5e:2x2
jax: 0.10.0
libtpu: 0.0.40
codegen_flags: <defaults>
</compile_context>

<pallas_src>
import jax
import jax.numpy as jnp
from jax.experimental import pallas as pl
from jax.experimental.pallas import tpu as pltpu


def _round_up(x, m):
    return ((x + m - 1) // m) * m


def _multimlp_kernel(x_ref, wf_ref, bfp_ref, w2_ref, b2p_ref, out_ref):
    # x_ref:   (tm, T*K)    bf16 row tile, K = V*S*D, ordering (v, s, d)
    # wf_ref:  (T, K, H)    bf16 fused (shared_bottom ⊗ view-head ⊗ Linear1 ⊗ BN) weight
    # bfp_ref: (1, T*H)     f32 fused bias, packed task-major
    # w2_ref:  (T*H, T*O)   bf16 block-diagonal second-layer weight
    # b2p_ref: (1, T*O)     f32 packed second-layer bias
    # out_ref: (tm, T*O)    f32 lane-dense output slab
    num_tasks, k_dim, _hidden = wf_ref.shape

    # First stage: per-task (tm, K) @ (K, H) on the MXU, fp32 accumulation.
    # Static unroll — T is tiny.  TODO(synk): switch to lax.fori_loop / a grid
    # axis over tasks if num_tasks grows large.
    h_parts = []
    for t in range(num_tasks):
        xt = x_ref[:, t * k_dim:(t + 1) * k_dim]          # 128-aligned lane slice
        h_parts.append(
            jnp.dot(xt, wf_ref[t], preferred_element_type=jnp.float32))

    # Pack tasks along lanes, single fp32 bias add + ReLU (Dropout = id in eval).
    h = jnp.concatenate(h_parts, axis=-1) + bfp_ref[...]   # (tm, T*H) f32
    h = jnp.maximum(h, 0.0)

    # Second stage: one lane-dense matmul against the block-diagonal weight.
    out = jnp.dot(h.astype(w2_ref.dtype), w2_ref[...],
                  preferred_element_type=jnp.float32) + b2p_ref[...]
    out_ref[...] = out.astype(out_ref.dtype)


def multi_mlp_forward(x, fused, *, row_tile=128):
    """x: (bsz, T, V, S, D); fused: dict from fuse_params. Returns list of (bsz, O)."""
    bsz = x.shape[0]
    num_tasks, k_dim, hidden = fused["wf"].shape
    t_out = fused["w2bd"].shape[-1]
    output_dim = t_out // num_tasks

    # Pure reshape (no transpose / no copy): the (v,s,d) contraction order is
    # baked into the fused weight.  bf16 halves the activation HBM bytes.
    x_flat = x.reshape(bsz, num_tasks * k_dim).astype(jnp.bfloat16)

    # Row tiling: pad rows to a multiple of the tile so the grid is exact.
    tm = min(row_tile, _round_up(bsz, 8))
    bsz_pad = _round_up(bsz, tm)
    if bsz_pad != bsz:
        x_flat = jnp.pad(x_flat, ((0, bsz_pad - bsz), (0, 0)))
    grid = (bsz_pad // tm,)

    flops = 2 * bsz_pad * (num_tasks * k_dim * hidden
                           + (num_tasks * hidden) * t_out)
    bytes_accessed = int(
        x_flat.size * 2                      # bf16 activations
        + fused["wf"].size * 2               # bf16 fused weight
        + fused["bfp"].size * 4
        + fused["w2bd"].size * 2
        + fused["b2p"].size * 4
        + bsz_pad * t_out * 4)               # fp32 output

    out = pl.pallas_call(
        _multimlp_kernel,
        out_shape=jax.ShapeDtypeStruct((bsz_pad, t_out), jnp.float32),
        grid=grid,
        in_specs=[
            pl.BlockSpec((tm, num_tasks * k_dim), lambda i: (i, 0)),       # x row tile
            pl.BlockSpec((num_tasks, k_dim, hidden), lambda i: (0, 0, 0)), # Wf (resident)
            pl.BlockSpec((1, num_tasks * hidden), lambda i: (0, 0)),       # fused bias
            pl.BlockSpec((num_tasks * hidden, t_out), lambda i: (0, 0)),   # block-diag W2
            pl.BlockSpec((1, t_out), lambda i: (0, 0)),                    # packed b2
        ],
        out_specs=pl.BlockSpec((tm, t_out), lambda i: (i, 0)),
        compiler_params=pltpu.CompilerParams(
            dimension_semantics=("parallel",)),  # shards row tiles across v7x's 2 TCs
        cost_estimate=pl.CostEstimate(
            flops=flops, transcendentals=0, bytes_accessed=bytes_accessed),
    )(x_flat, fused["wf"], fused["bfp"], fused["w2bd"], fused["b2p"])

    out = out[:bsz]
    # PyTorch returns a python list of per-task outputs.
    return [out[:, t * output_dim:(t + 1) * output_dim] for t in range(num_tasks)]


def init_params(key, num_tasks, num_views, seq_len, sensor_dim, hidden_dim, output_dim):
    """Raw PyTorch-style parameters, nn.Linear U(-1/sqrt(fan_in), 1/sqrt(fan_in)) init."""
    ks = jax.random.split(key, 8)

    def u(k, shape, fan_in):
        bound = 1.0 / float(fan_in) ** 0.5
        return jax.random.uniform(k, shape, jnp.float32, -bound, bound)

    return dict(
        ws=u(ks[0], (sensor_dim,), sensor_dim),                       # shared_bottom.weight
        bs=u(ks[1], (), sensor_dim),                                  # shared_bottom.bias
        wv=u(ks[2], (num_tasks, num_views), num_views),               # specific_tasks_2[t].weight
        bv=u(ks[3], (num_tasks,), num_views),                         # specific_tasks_2[t].bias
        w1=u(ks[4], (num_tasks, hidden_dim, seq_len), seq_len),       # towers[t][0].weight
        b1=u(ks[5], (num_tasks, hidden_dim), seq_len),                # towers[t][0].bias
        w2=u(ks[6], (num_tasks, output_dim, hidden_dim), hidden_dim), # towers[t][4].weight
        b2=u(ks[7], (num_tasks, output_dim), hidden_dim),             # towers[t][4].bias
        gamma=jnp.ones((num_tasks, hidden_dim), jnp.float32),         # BatchNorm1d (fresh init)
        beta=jnp.zeros((num_tasks, hidden_dim), jnp.float32),
        rmean=jnp.zeros((num_tasks, hidden_dim), jnp.float32),
        rvar=jnp.ones((num_tasks, hidden_dim), jnp.float32),
    )


def fuse_params(p, eps=1e-5):
    """Fold shared_bottom, view head, tower Linear(S,H) and eval-mode BN into one matmul,
    pack biases, and build the block-diagonal second-layer weight."""
    ws, bs = p["ws"], p["bs"]
    wv, bv = p["wv"], p["bv"]
    w1, b1 = p["w1"], p["b1"]
    w2, b2 = p["w2"], p["b2"]

    bn_scale = p["gamma"] / jnp.sqrt(p["rvar"] + eps)        # (T, H)
    bn_shift = p["beta"] - p["rmean"] * bn_scale             # (T, H)

    # Wf[t, v, s, d, h] = wv[t,v] * W1[t,h,s] * ws[d]   (ordering matches x.reshape)
    wf = jnp.einsum("tv,ths,d->tvsdh", wv, w1, ws)           # (T, V, S, D, H)
    num_tasks, V, S, D, H = wf.shape
    wf = wf.reshape(num_tasks, V * S * D, H) * bn_scale[:, None, :]

    bf = (bs * jnp.sum(wv, axis=-1) + bv)[:, None] * jnp.sum(w1, axis=-1) + b1
    bf = bf * bn_scale + bn_shift                            # (T, H)

    # Block-diagonal second-layer weight: (T*H, T*O); tasks never mix.
    O = w2.shape[1]
    w2t = jnp.transpose(w2, (0, 2, 1))                       # (T, H, O)
    w2bd = jnp.zeros((num_tasks * H, num_tasks * O), jnp.float32)
    for t in range(num_tasks):
        w2bd = w2bd.at[t * H:(t + 1) * H, t * O:(t + 1) * O].set(w2t[t])

    return dict(
        wf=wf.astype(jnp.bfloat16),                          # (T, K, H)   bf16 MXU operand
        bfp=bf.reshape(1, num_tasks * H).astype(jnp.float32),# (1, T*H)    fp32 epilogue
        w2bd=w2bd.astype(jnp.bfloat16),                      # (T*H, T*O)  bf16 MXU operand
        b2p=b2.reshape(1, num_tasks * O).astype(jnp.float32),# (1, T*O)    fp32 epilogue
    )


def _reference_forward(x, p, eps=1e-5):
    """Pure-JAX fp32 reference mirroring the PyTorch forward (eval mode), RAW params."""
    bsz, T, V, S, D = x.shape
    xt = jnp.swapaxes(x, 2, 3)                                          # (b, T, S, V, D)
    y = jnp.einsum("btsvd,d->btsv", xt, p["ws"]) + p["bs"]              # shared bottom
    bn_scale = p["gamma"] / jnp.sqrt(p["rvar"] + eps)
    bn_shift = p["beta"] - p["rmean"] * bn_scale
    outs = []
    for t in range(T):
        z = jnp.einsum("bsv,v->bs", y[:, t], p["wv"][t]) + p["bv"][t]   # view head
        h = z @ p["w1"][t].T + p["b1"][t]                               # tower Linear1
        h = h * bn_scale[t] + bn_shift[t]                               # BN (eval)
        h = jnp.maximum(h, 0.0)                                         # ReLU (Dropout=id)
        outs.append(h @ p["w2"][t].T + p["b2"][t])                      # tower Linear2
    return outs


if __name__ == "__main__":
    # Toy feature dims; batch raised to 256 so the weight DMA is amortized and the
    # row-tile grid (2 parallel steps of 128 rows) exercises v7x's two TensorCores.
    bsz, num_tasks, num_views, seq_len = 256, 3, 4, 8
    sensor_dim, hidden_dim, output_dim = 16, 32, 4

    key = jax.random.PRNGKey(0)
    kx, kp = jax.random.split(key)
    x = jax.random.normal(kx, (bsz, num_tasks, num_views, seq_len, sensor_dim),
                          dtype=jnp.float32)
    raw_params = init_params(kp, num_tasks, num_views, seq_len, sensor_dim,
                             hidden_dim, output_dim)
    fused_params = fuse_params(raw_params)   # one-time weight preprocessing

    outs = multi_mlp_forward(x, fused_params)
    outs = [jax.block_until_ready(o) for o in outs]

    refs = _reference_forward(x, raw_params)
    for o, r in zip(outs, refs):
        assert o.shape == (bsz, output_dim)
        # bf16 MXU operands -> looser tolerance than the old fp32-only kernel.
        assert jnp.allclose(o.astype(jnp.float32), r, atol=2e-2, rtol=2e-2), \
            "mismatch vs JAX reference"

    print("KERNEL_OK")
</pallas_src>

<mosaic_0001>
module attributes {stable_mosaic.version = 11 : i64} {
  func.func @_multimlp_kernel(%arg0: i32, %arg1: memref<128x1536xbf16, #tpu.memory_space<vmem>>, %arg2: memref<3x512x32xbf16, #tpu.memory_space<vmem>>, %arg3: memref<1x96xf32, #tpu.memory_space<vmem>>, %arg4: memref<96x12xbf16, #tpu.memory_space<vmem>>, %arg5: memref<1x12xf32, #tpu.memory_space<vmem>>, %arg6: memref<128x12xf32, #tpu.memory_space<vmem>>) attributes {dimension_semantics = [#tpu.dimension_semantics<parallel>], iteration_bounds = array<i64: 2>, scalar_prefetch = 0 : i64, scratch_operands = 0 : i64, tpu.core_type = #tpu.core_type<tc>, window_params = [{transform_indices = @transform_0, window_bounds = array<i64: 128, 1536>}, {pipeline_mode = #tpu.pipeline_mode<synchronous>, transform_indices = @transform_1, window_bounds = array<i64: 3, 512, 32>}, {pipeline_mode = #tpu.pipeline_mode<synchronous>, transform_indices = @transform_2, window_bounds = array<i64: 1, 96>}, {pipeline_mode = #tpu.pipeline_mode<synchronous>, transform_indices = @transform_3, window_bounds = array<i64: 96, 12>}, {pipeline_mode = #tpu.pipeline_mode<synchronous>, transform_indices = @transform_4, window_bounds = array<i64: 1, 12>}, {transform_indices = @transform_5, window_bounds = array<i64: 128, 12>}]} {
    %c0 = arith.constant 0 : index
    %c0_0 = arith.constant 0 : index
    %0 = vector.load %arg1[%c0, %c0_0] : memref<128x1536xbf16, #tpu.memory_space<vmem>>, vector<128x512xbf16>
    %c0_1 = arith.constant 0 : index
    %c0_2 = arith.constant 0 : index
    %c0_3 = arith.constant 0 : index
    %1 = vector.load %arg2[%c0_1, %c0_2, %c0_3] : memref<3x512x32xbf16, #tpu.memory_space<vmem>>, vector<1x512x32xbf16>
    %2 = vector.shape_cast %1 : vector<1x512x32xbf16> to vector<512x32xbf16>
    %cst = arith.constant dense<0.000000e+00> : vector<128x32xf32>
    %3 = tpu.matmul %0, %2, %cst {dimension_numbers = #tpu.dot_dimension_numbers<[1], [0], [0], [1], [0, 0, 1, 1], [], []>} : vector<128x512xbf16>, vector<512x32xbf16>, vector<128x32xf32> -> vector<128x32xf32>
    %c0_4 = arith.constant 0 : index
    %c512 = arith.constant 512 : index
    %4 = vector.load %arg1[%c0_4, %c512] : memref<128x1536xbf16, #tpu.memory_space<vmem>>, vector<128x512xbf16>
    %c1 = arith.constant 1 : index
    %c0_5 = arith.constant 0 : index
    %c0_6 = arith.constant 0 : index
    %5 = vector.load %arg2[%c1, %c0_5, %c0_6] : memref<3x512x32xbf16, #tpu.memory_space<vmem>>, vector<1x512x32xbf16>
    %6 = vector.shape_cast %5 : vector<1x512x32xbf16> to vector<512x32xbf16>
    %cst_7 = arith.constant dense<0.000000e+00> : vector<128x32xf32>
    %7 = tpu.matmul %4, %6, %cst_7 {dimension_numbers = #tpu.dot_dimension_numbers<[1], [0], [0], [1], [0, 0, 1, 1], [], []>} : vector<128x512xbf16>, vector<512x32xbf16>, vector<128x32xf32> -> vector<128x32xf32>
    %c0_8 = arith.constant 0 : index
    %c1024 = arith.constant 1024 : index
    %8 = vector.load %arg1[%c0_8, %c1024] : memref<128x1536xbf16, #tpu.memory_space<vmem>>, vector<128x512xbf16>
    %c2 = arith.constant 2 : index
    %c0_9 = arith.constant 0 : index
    %c0_10 = arith.constant 0 : index
    %9 = vector.load %arg2[%c2, %c0_9, %c0_10] : memref<3x512x32xbf16, #tpu.memory_space<vmem>>, vector<1x512x32xbf16>
    %10 = vector.shape_cast %9 : vector<1x512x32xbf16> to vector<512x32xbf16>
    %cst_11 = arith.constant dense<0.000000e+00> : vector<128x32xf32>
    %11 = tpu.matmul %8, %10, %cst_11 {dimension_numbers = #tpu.dot_dimension_numbers<[1], [0], [0], [1], [0, 0, 1, 1], [], []>} : vector<128x512xbf16>, vector<512x32xbf16>, vector<128x32xf32> -> vector<128x32xf32>
    %12 = tpu.concatenate %3, %7, %11 in 1 : vector<128x32xf32>, vector<128x32xf32>, vector<128x32xf32> -> vector<128x96xf32>
    %c0_12 = arith.constant 0 : index
    %c0_13 = arith.constant 0 : index
    %13 = vector.load %arg3[%c0_12, %c0_13] : memref<1x96xf32, #tpu.memory_space<vmem>>, vector<1x96xf32>
    %14 = vector.broadcast %13 : vector<1x96xf32> to vector<128x96xf32>
    %15 = arith.addf %12, %14 : vector<128x96xf32>
    %cst_14 = arith.constant 0.000000e+00 : f32
    %16 = vector.broadcast %cst_14 : f32 to vector<128x96xf32>
    %17 = arith.maximumf %15, %16 : vector<128x96xf32>
    %18 = arith.truncf %17 : vector<128x96xf32> to vector<128x96xbf16>
    %c0_15 = arith.constant 0 : index
    %c0_16 = arith.constant 0 : index
    %19 = vector.load %arg4[%c0_15, %c0_16] : memref<96x12xbf16, #tpu.memory_space<vmem>>, vector<96x12xbf16>
    %cst_17 = arith.constant dense<0.000000e+00> : vector<128x12xf32>
    %20 = tpu.matmul %18, %19, %cst_17 {dimension_numbers = #tpu.dot_dimension_numbers<[1], [0], [0], [1], [0, 0, 1, 1], [], []>} : vector<128x96xbf16>, vector<96x12xbf16>, vector<128x12xf32> -> vector<128x12xf32>
    %c0_18 = arith.constant 0 : index
    %c0_19 = arith.constant 0 : index
    %21 = vector.load %arg5[%c0_18, %c0_19] : memref<1x12xf32, #tpu.memory_space<vmem>>, vector<1x12xf32>
    %22 = vector.broadcast %21 : vector<1x12xf32> to vector<128x12xf32>
    %23 = arith.addf %20, %22 : vector<128x12xf32>
    %c0_20 = arith.constant 0 : index
    %c0_21 = arith.constant 0 : index
    %24 = vector.load %arg6[%c0_20, %c0_21] : memref<128x12xf32, #tpu.memory_space<vmem>>, vector<128x12xf32>
    tpu.vector_store %arg6[%c0_20, %c0_21], %23 {strides = array<i32>} : memref<128x12xf32, #tpu.memory_space<vmem>>, vector<128x12xf32>,
    return
  }
  func.func @transform_0(%arg0: i32) -> (i32, i32) {
    %c0_i32 = arith.constant 0 : i32
    %c0_i32_0 = arith.constant 0 : i32
    return %arg0, %c0_i32 : i32, i32
  }
  func.func @transform_1(%arg0: i32) -> (i32, i32, i32) {
    %c0_i32 = arith.constant 0 : i32
    %c0_i32_0 = arith.constant 0 : i32
    %c0_i32_1 = arith.constant 0 : i32
    %c0_i32_2 = arith.constant 0 : i32
    return %c0_i32, %c0_i32_0, %c0_i32_1 : i32, i32, i32
  }
  func.func @transform_2(%arg0: i32) -> (i32, i32) {
    %c0_i32 = arith.constant 0 : i32
    %c0_i32_0 = arith.constant 0 : i32
    %c0_i32_1 = arith.constant 0 : i32
    return %c0_i32, %c0_i32_0 : i32, i32
  }
  func.func @transform_3(%arg0: i32) -> (i32, i32) {
    %c0_i32 = arith.constant 0 : i32
    %c0_i32_0 = arith.constant 0 : i32
    %c0_i32_1 = arith.constant 0 : i32
    return %c0_i32, %c0_i32_0 : i32, i32
  }
  func.func @transform_4(%arg0: i32) -> (i32, i32) {
    %c0_i32 = arith.constant 0 : i32
    %c0_i32_0 = arith.constant 0 : i32
    %c0_i32_1 = arith.constant 0 : i32
    return %c0_i32, %c0_i32_0 : i32, i32
  }
  func.func @transform_5(%arg0: i32) -> (i32, i32) {
    %c0_i32 = arith.constant 0 : i32
    %c0_i32_0 = arith.constant 0 : i32
    return %arg0, %c0_i32 : i32, i32
  }
}

</mosaic_0001>

<bundles_post_ra>
// kernel: tpu_custom_call.1
= control target key start
LH: loop header
LB: loop body
LE: loop exit
PB: predicated region body
PF: predicated region fallthrough
CT: control target
= control target key end

     0   :  { %10 = vsyncpa [#allocation3], 0  ;;  %s4782_s0 = inlined_call_operand.hbm [shape: bf16[256,1536], index: 0, kind: input, shape index: {}]   ;;  %s4783_s1 = inlined_call_operand.vmem [shape: bf16[3,512,32], index: 1, kind: input, shape index: {}]   ;;  %s4784_s2 = inlined_call_operand.vmem [shape: f32[1,96], index: 2, kind: input, shape index: {}]   ;;  %s4785_s3 = inlined_call_operand.vmem [shape: bf16[96,12], index: 3, kind: input, shape index: {}]   ;;  %s4786_s4 = inlined_call_operand.vmem [shape: f32[1,12], index: 4, kind: input, shape index: {}]   ;;  %s4787_s5 = inlined_call_operand.vmem [shape: f32[256,12], index: 5, kind: output, shape index: {}]  }
   0x1   :  { %12 = vsyncpa [#allocation3 + $0x1], 0  ;;  %s3911_s18 = smov 0   ;;  %s3913_s19 = smov 0  }
   0x2   :  { %s3915_s20 = smov 0   ;;  %s3917_s21 = smov 0  }
   0x3 LB: > { %s2601_s22 = sadd.s32 4294967295, %s3875_s21   ;;  %s3931_s23 = sadd.s32 1, %s3875_s21   ;;  %s3875_s21 = sphi %s3917_s21, %s4793_s21   ;;  %s3871_s20 = sphi %s3915_s20, %s4792_s20   ;;  %s3867_s19 = sphi %s3913_s19, %s4791_s19   ;;  %s3863_s18 = sphi %s3911_s18, %s4790_s18  }
   0x4   : > { %s22_s24 = ssub.s32 %s3875_s21, %s3931_s23  ;;  %s25_s25 = sadd.s32 1, %s3871_s20 }
   0x5   : > { %p23_p0 = scmp.eq.s32.totalorder %s22_s24, 0  ;;  %p32_p1 = scmp.ne.s32.totalorder %s3871_s20, %s3867_s19 }
   0x6   : > { %p33_p2 = scmp.eq.s32.totalorder %s3875_s21, 0  ;;  %p38_p3 = scmp.ne.s32.totalorder %s3867_s19, %s3863_s18 }
   0x7   : > { %s3941_s26 = scalar_select %p23_p0, %s3871_s20, %s25_s25  }
   0x8   : > { %p34_p4 = por %p33_p2, %p32_p1  ;;  %p39_p5 = scmp.eq.s32.totalorder %s2601_s22, 0 }
   0x9   : > { %p3772_p6 = scmp.lt.s32.totalorder %s3875_s21, 2  ;;  %s184_s28 = sand.u32 1, %s3871_s20  }
   0xa   : > { %p3946_p7 = por %p39_p5, %p38_p3  ;;  %s3763_s29 = smul.u32 768, %s184_s28 }
   0xb   : > { %s3764_s30 = smul.u32 768, %s3875_s21  ;;  %p3952_p8 = pnand %p3772_p6, %p34_p4 }
   0xc   : > { %s188_s10 = scalar_lea.vmem [#allocation2], %s3763_s29  ;;  %p2608_p9 = scmp.ge.s32.totalorder %s3875_s21, 1 }
   0xd   : > { %s194_s9 = scalar_lea.hbm %s4782_s0, %s3764_s30  ;;  %s197_s11 = sshll.u32 %s188_s10, 4  ;;  %s198_s11 = int_to_ptr.vmem [resolvable:$true] %s197_s11 }
   0xe   : > { %s195_s12 = sshll.u32 %s194_s9, 4  ;;  %s185_s13 = scalar_lea.sflag [#allocation3], %s184_s28  ;;  %s196_s12 = int_to_ptr.hbm [resolvable:$true] %s195_s12 }
   0xf   : > { %s3811_s14 = sshra.s32 %s196_s12, 4  ;;  %p3815_p11 = pneg %p3952_p8  ;;  %s3812_s14 = int_to_ptr.hbm [resolvable:$true] %s3811_s14 }
  0x10   : > { %s3813_s15 = scalar_lea.hbm %s3812_s14, 768  ;;  %s3818_s18 = scalar_lea.hbm %s4782_s0, 1536 }
  0x11   : > { %p3814_p10 = scmp.ne.s32.totalorder %s3812_s14, %s3813_s15  ;;  %p3819_p0 = scmp.lt.s32.totalorder %s3812_s14, %s4782_s0 }
  0x12   : > { %p3820_p1 = scmp.lt.s32.totalorder %s3818_s18, %s3813_s15 }
  0x13   : > { %p3816_p12 = pnand %p3815_p11, %p3814_p10 }
  0x14   : > { %p3821_p2 = por %p3820_p1, %p3819_p0 }
  0x15   : > { %p3817_p13 = pneg %p3816_p12 }
  0x17   : > { %p3822_p3 = pnand %p3821_p2, %p3817_p13 }
  0x19   : > { %3825 = shalt.err (!%p3822_p3)
}
  0x1a   : > { %s3877_s28 = smov 768   ;;  %s3878_s29 = smov 48  }
  0x1b   : > { %3771 = dma.hbm_to_vmem [thread:$0]  (!%p3952_p8), %s196_s12, 12288, %s198_s11, %s185_s13, %s3877_s28, %s3877_s28, %s3878_s29  }
  0x1c   : > { %p205_p4 = scmp.lt.s32.totalorder %s3875_s21, 3 }
  0x1e   : > { %p206_p5 = pnand %p2608_p9, %p205_p4 }
  0x1f   : > { %s211_s30 = sand.u32 (!%p206_p5), 1, %s3867_s19  }
  0x20   : > { %209 = sbr.rel (%p206_p5) target bundleno = 874 (0x36a), region = 40  ;;  %s212_s8 = scalar_lea.sflag (!%p206_p5), [#allocation3], %s211_s30 }
  0x21   : > { %s3765_s7 = smul.u32 (!%p206_p5), 768, %s211_s30 }
  0x23   : > { %s3974_s9 = scalar_lea.vmem (!%p206_p5), [#allocation2], %s3765_s7 }
  0x25   : > { %3858 = dma.done.wait (%p3946_p7), %s212_s8, 12288  }
  0x26   : > { %3860 = vsyncadd (%p3946_p7), %s212_s8, 4294955008  ;;  %v3580_v0 = vld [vmem:[%s4783_s1 + $0x38] sm:$0xff]  ;;  %v3579_v1 = vld [vmem:[%s4783_s1 + $0x30] sm:$0xff]  ;;  %s3879_s25 = smov 32   ;;  %s3880_s7 = smov 64   ;;  %vm2330_vm0 = vcmask 523264  }
  0x27   : > { %3739 = vmatpush.bf16.msra.mxu1 %v3580_v0  ;;  %3740 = vmatpush.bf16.msra.mxu2 %v3580_v0  ;;  %v3578_v2 = vld [vmem:[%s4783_s1 + $0x28] sm:$0xff]  ;;  %v3577_v3 = vld [vmem:[%s4783_s1 + $0x20] sm:$0xff]  ;;  %v3576_v4 = vld [vmem:[%s4783_s1 + $0x18] sm:$0xff]  ;;  %vm2313_vm1 = vcmask 261120   ;;  %vm2443_vm2 = vcmask 785408   ;;  %s2609_s17 = sshll.u32 %s2601_s22, 4 }
  0x28   : > { %3741 = vmatpush.bf16.msra.mxu3 %v3580_v0  ;;  %699 = vmatpush.bf16.msra.mxu0 %v3580_v0  ;;  %v3575_v5 = vld [vmem:[%s4783_s1 + $0x10] sm:$0xff]  ;;  %v3574_v6 = vld [vmem:[%s4783_s1 + $0x8] sm:$0xff]  ;;  %v3573_v7 = vld [vmem:[%s4783_s1] sm:$0xff]  ;;  %p245_p6 = scmp.lt.s32.totalorder %s2609_s17, 31  ;;  %vm2517_vm3 = vcmask 97280  }
  0x29   : > { %v2645_v8 = vld [vmem:[%s3974_s9 + $0xc0] sm:$0xf]  ;;  %v3551_v9 = vld [vmem:[%s3974_s9 + $0xec] sm:$0xf0]  ;;  %v3596_v14 = vld [vmem:[%s4783_s1 + $0xb8] sm:$0xff] }
  0x2a   : > { %v2677_v10 = vld [vmem:[%s3974_s9 + $0x180] sm:$0xf]  ;;  %v3559_v11 = vld [vmem:[%s3974_s9 + $0x1ac] sm:$0xf0]  ;;  %v3588_v15 = vld [vmem:[%s4783_s1 + $0x78] sm:$0xff]  ;;  %v2646_v17 = vor.u32 %v3551_v9, %v2645_v8  ;;  %s4795_s17 = smov (!%p245_p6, %s2609_s17), 31 }
  0x2b   : > { %3742 = vmatpush.bf16.msra.mxu1 %v3579_v1  ;;  %3743 = vmatpush.bf16.msra.mxu2 %v3579_v1  ;;  %v2709_v12 = vld [vmem:[%s3974_s9 + $0x240] sm:$0xf]  ;;  %v3567_v13 = vld [vmem:[%s3974_s9 + $0x26c] sm:$0xf0]  ;;  %v3604_v16 = vld [vmem:[%s4783_s1 + $0xf8] sm:$0xff]  ;;  %v2678_v18 = vor.u32 %v3559_v11, %v2677_v10  ;;  %s2610_s18 = sshll.u32 %s4795_s17, 3 }
  0x2c   : > { %3744 = vmatpush.bf16.msra.mxu3 %v3579_v1  ;;  %700 = vmatpush.bf16.msra.mxu0 %v3579_v1  ;;  %v2710_v19 = vor.u32 %v3567_v13, %v2709_v12  ;;  %v2613_v20 = vld [vmem:[%s3974_s9] sm:$0xf]  ;;  %v3543_v21 = vld [vmem:[%s3974_s9 + $0x2c] sm:$0xf0]  ;;  %v3594_v26 = vld [vmem:[%s4783_s1 + $0xa8] sm:$0xff] }
  0x2d   : > { %v3595_v22 = vld [vmem:[%s4783_s1 + $0xb0] sm:$0xff]  ;;  %v2614_v25 = vor.u32 %v3543_v21, %v2613_v20  ;;  %v3586_v27 = vld [vmem:[%s4783_s1 + $0x68] sm:$0xff]  ;;  %v3593_v29 = vld [vmem:[%s4783_s1 + $0xa0] sm:$0xff] }
  0x2e   : > { %v3587_v23 = vld [vmem:[%s4783_s1 + $0x70] sm:$0xff]  ;;  %v3602_v28 = vld [vmem:[%s4783_s1 + $0xe8] sm:$0xff]  ;;  %v3585_v30 = vld [vmem:[%s4783_s1 + $0x60] sm:$0xff] }
  0x2f   : > { %3745 = vmatpush.bf16.msra.mxu1 %v3578_v2  ;;  %3746 = vmatpush.bf16.msra.mxu2 %v3578_v2  ;;  %v3603_v24 = vld [vmem:[%s4783_s1 + $0xf0] sm:$0xff]  ;;  %v3601_v31 = vld [vmem:[%s4783_s1 + $0xe0] sm:$0xff]  ;;  %v3592_v38 = vld [vmem:[%s4783_s1 + $0x98] sm:$0xff] }
  0x30   : > { %3747 = vmatpush.bf16.msra.mxu3 %v3578_v2  ;;  %701 = vmatpush.bf16.msra.mxu0 %v3578_v2  ;;  %v2661_v32 = vld [vmem:[%s3974_s9 + $0x120] sm:$0xf]  ;;  %v3555_v33 = vld [vmem:[%s3974_s9 + $0x14c] sm:$0xf0]  ;;  %v3584_v39 = vld [vmem:[%s4783_s1 + $0x58] sm:$0xff] }
  0x31   : > { %v2693_v34 = vld [vmem:[%s3974_s9 + $0x1e0] sm:$0xf]  ;;  %v3563_v35 = vld [vmem:[%s3974_s9 + $0x20c] sm:$0xf0]  ;;  %v3600_v40 = vld [vmem:[%s4783_s1 + $0xd8] sm:$0xff]  ;;  %v2662_v41 = vor.u32 %v3555_v33, %v2661_v32 }
  0x32   : > { %v2725_v36 = vld [vmem:[%s3974_s9 + $0x2a0] sm:$0xf]  ;;  %v3571_v37 = vld [vmem:[%s3974_s9 + $0x2cc] sm:$0xf0]  ;;  %v2694_v42 = vor.u32 %v3563_v35, %v2693_v34  ;;  %v3590_v50 = vld [vmem:[%s4783_s1 + $0x88] sm:$0xff] }
  0x33   : > { %3748 = vmatpush.bf16.msra.mxu1 %v3577_v3  ;;  %3749 = vmatpush.bf16.msra.mxu2 %v3577_v3  ;;  %v2726_v43 = vor.u32 %v3571_v37, %v2725_v36  ;;  %v2629_v44 = vld [vmem:[%s3974_s9 + $0x60] sm:$0xf]  ;;  %v3547_v45 = vld [vmem:[%s3974_s9 + $0x8c] sm:$0xf0]  ;;  %v3582_v51 = vld [vmem:[%s4783_s1 + $0x48] sm:$0xff] }
  0x34   : > { %3750 = vmatpush.bf16.msra.mxu3 %v3577_v3  ;;  %702 = vmatpush.bf16.msra.mxu0 %v3577_v3  ;;  %v3591_v46 = vld [vmem:[%s4783_s1 + $0x90] sm:$0xff]  ;;  %v2630_v49 = vor.u32 %v3547_v45, %v2629_v44  ;;  %v3598_v52 = vld [vmem:[%s4783_s1 + $0xc8] sm:$0xff]  ;;  %v3589_v53 = vld [vmem:[%s4783_s1 + $0x80] sm:$0xff] }
  0x35   : > { %v3583_v47 = vld [vmem:[%s4783_s1 + $0x50] sm:$0xff]  ;;  %v3581_v54 = vld [vmem:[%s4783_s1 + $0x40] sm:$0xff]  ;;  %v3660_v58 = vld [vmem:[%s4783_s1 + $0x1b8] sm:$0xff] }
  0x36   : > { %v3599_v48 = vld [vmem:[%s4783_s1 + $0xd0] sm:$0xff]  ;;  %v3597_v55 = vld [vmem:[%s4783_s1 + $0xc0] sm:$0xff]  ;;  %v3668_v59 = vld [vmem:[%s4783_s1 + $0x1f8] sm:$0xff] }
  0x37   : > { %3751 = vmatpush.bf16.msra.mxu1 %v3576_v4  ;;  %3752 = vmatpush.bf16.msra.mxu2 %v3576_v4  ;;  %v3541_v56 = vld [vmem:[%s3974_s9 + $0x4] sm:$0xf]  ;;  %v2615_v57 = vld [vmem:[%s3974_s9 + $0x30] sm:$0xf0]  ;;  %v2621_v60 = vld [vmem:[%s3974_s9 + $0x8] sm:$0xf] }
  0x38   : > { %3753 = vmatpush.bf16.msra.mxu3 %v3576_v4  ;;  %703 = vmatpush.bf16.msra.mxu0 %v3576_v4  ;;  %v3544_v61 = vld [vmem:[%s3974_s9 + $0x34] sm:$0xf0]  ;;  %v3542_v63 = vld [vmem:[%s3974_s9 + $0xc] sm:$0xf]  ;;  %v2623_v0 = vld [vmem:[%s3974_s9 + $0x38] sm:$0xf0]  ;;  %v2618_v1 = vor.u32 %v3541_v56, %v2615_v57 }
  0x39   : > { %v3652_v62 = vld [vmem:[%s4783_s1 + $0x178] sm:$0xff]  ;;  %v2622_v2 = vor.u32 %v3544_v61, %v2621_v60  ;;  %v2626_v3 = vor.u32 %v3542_v63, %v2623_v0  ;;  %v3659_v4 = vld [vmem:[%s4783_s1 + $0x1b0] sm:$0xff]  ;;  %v3666_v8 = vld [vmem:[%s4783_s1 + $0x1e8] sm:$0xff] }
  0x3a   : > { %v3650_v9 = vld [vmem:[%s4783_s1 + $0x168] sm:$0xff]  ;;  %v3545_v10 = vld [vmem:[%s3974_s9 + $0x64] sm:$0xf]  ;;  %v2631_v11 = vld [vmem:[%s3974_s9 + $0x90] sm:$0xf0] }
  0x3b   : > { %3754 = vmatpush.bf16.msra.mxu1 %v3575_v5  ;;  %3755 = vmatpush.bf16.msra.mxu2 %v3575_v5  ;;  %v2637_v12 = vld [vmem:[%s3974_s9 + $0x68] sm:$0xf]  ;;  %v3548_v13 = vld [vmem:[%s3974_s9 + $0x94] sm:$0xf0]  ;;  %v3665_v20 = vld [vmem:[%s4783_s1 + $0x1e0] sm:$0xff] }
  0x3c   : > { %3756 = vmatpush.bf16.msra.mxu3 %v3575_v5  ;;  %704 = vmatpush.bf16.msra.mxu0 %v3575_v5  ;;  %v3667_v5 = vld [vmem:[%s4783_s1 + $0x1f0] sm:$0xff]  ;;  %v3649_v21 = vld [vmem:[%s4783_s1 + $0x160] sm:$0xff]  ;;  %v3664_v32 = vld [vmem:[%s4783_s1 + $0x1d8] sm:$0xff] }
  0x3d   : > { %v3648_v33 = vld [vmem:[%s4783_s1 + $0x158] sm:$0xff]  ;;  %v3553_v34 = vld [vmem:[%s3974_s9 + $0x124] sm:$0xf]  ;;  %v2663_v35 = vld [vmem:[%s3974_s9 + $0x150] sm:$0xf0] }
  0x3e   : > { %v2669_v36 = vld [vmem:[%s3974_s9 + $0x128] sm:$0xf]  ;;  %v3556_v37 = vld [vmem:[%s3974_s9 + $0x154] sm:$0xf0]  ;;  %v3663_v44 = vld [vmem:[%s4783_s1 + $0x1d0] sm:$0xff] }
  0x3f   : > { %3757 = vmatpush.bf16.msra.mxu1 %v3574_v6  ;;  %3758 = vmatpush.bf16.msra.mxu2 %v3574_v6  ;;  %v3647_v45 = vld [vmem:[%s4783_s1 + $0x150] sm:$0xff]  ;;  %v3654_v57 = vld [vmem:[%s4783_s1 + $0x188] sm:$0xff]  ;;  %v3641_v61 = vld [vmem:[%s4783_s1 + $0x120] sm:$0xff] }
  0x40   : > { %3759 = vmatpush.bf16.msra.mxu3 %v3574_v6  ;;  %705 = vmatpush.bf16.msra.mxu0 %v3574_v6  ;;  %v3651_v6 = vld [vmem:[%s4783_s1 + $0x170] sm:$0xff]  ;;  %v3642_v60 = vld [vmem:[%s4783_s1 + $0x128] sm:$0xff] }
  0x41   : > { %v3643_v56 = vld [vmem:[%s4783_s1 + $0x130] sm:$0xff]  ;;  %v2701_v0 = vld [vmem:[%s3974_s9 + $0x1e8] sm:$0xf] }
  0x42   : > { %v2695_v63 = vld [vmem:[%s3974_s9 + $0x210] sm:$0xf0] }
  0x43   : > { %3760 = vmatpush.bf16.msra.mxu1 %v3573_v7  ;;  %3761 = vmatpush.bf16.msra.mxu2 %v3573_v7 }
  0x44   : > { %3762 = vmatpush.bf16.msra.mxu3 %v3573_v7  ;;  %706 = vmatpush.bf16.msra.mxu0 %v3573_v7  ;;  %v3658_v7 = vld [vmem:[%s4783_s1 + $0x1a8] sm:$0xff] }
  0x46   : > { %717 = vmatmul.bf16.vlgmr.msra.gmra.mxu1 %v2646_v17  ;;  %727 = vmatmul.bf16.vlgmr.msra.gmra.mxu2 %v2678_v18  ;;  %v2638_v17 = vor.u32 %v3548_v13, %v2637_v12  ;;  %v3638_v12 = vld [vmem:[%s4783_s1 + $0x108] sm:$0xff]  ;;  %v3637_v13 = vld [vmem:[%s4783_s1 + $0x100] sm:$0xff] }
  0x47   : > { %797 = vmatpush.bf16.msrb.mxu2 %v3596_v14  ;;  %748 = vmatpush.bf16.msrb.mxu1 %v3588_v15  ;;  %v3546_v14 = vld [vmem:[%s3974_s9 + $0x6c] sm:$0xf]  ;;  %v2639_v15 = vld [vmem:[%s3974_s9 + $0x98] sm:$0xf0] }
  0x48   : > { %846 = vmatpush.bf16.msrb.mxu3 %v3604_v16  ;;  %707 = vmatmul.bf16.vlgmr.msra.gmra.mxu0 %v2614_v25  ;;  %v2634_v16 = vor.u32 %v3545_v10, %v2631_v11  ;;  %v2642_v18 = vor.u32 %v3546_v14, %v2639_v15  ;;  %v3552_v25 = vld [vmem:[%s3974_s9 + $0xf4] sm:$0xf0]  ;;  %v3661_v10 = vld [vmem:[%s4783_s1 + $0x1c0] sm:$0xff]  ;;  %v2711_v15 = vld [vmem:[%s3974_s9 + $0x270] sm:$0xf0] }
  0x49   : > { %737 = vmatmul.bf16.vlgmr.msra.gmra.mxu3 %v2710_v19  ;;  %v3657_v19 = vld [vmem:[%s4783_s1 + $0x1a0] sm:$0xff] }
  0x4a   : > { %v3645_v11 = vld [vmem:[%s4783_s1 + $0x140] sm:$0xff] }
  0x4b   : > { %798 = vmatpush.bf16.msrb.mxu2 %v3595_v22  ;;  %749 = vmatpush.bf16.msrb.mxu1 %v3587_v23  ;;  %v3549_v22 = vld [vmem:[%s3974_s9 + $0xc4] sm:$0xf]  ;;  %v2647_v23 = vld [vmem:[%s3974_s9 + $0xf0] sm:$0xf0] }
  0x4c   : > { %847 = vmatpush.bf16.msrb.mxu3 %v3603_v24  ;;  %v2653_v24 = vld [vmem:[%s3974_s9 + $0xc8] sm:$0xf]  ;;  %v3565_v14 = vld [vmem:[%s3974_s9 + $0x244] sm:$0xf] }
  0x4f   : > { %799 = vmatpush.bf16.msrb.mxu2 %v3594_v26  ;;  %750 = vmatpush.bf16.msrb.mxu1 %v3586_v27  ;;  %v3550_v26 = vld [vmem:[%s3974_s9 + $0xcc] sm:$0xf]  ;;  %v2655_v27 = vld [vmem:[%s3974_s9 + $0xf8] sm:$0xf0] }
  0x50   : > { %848 = vmatpush.bf16.msrb.mxu3 %v3602_v28  ;;  %v2650_v28 = vor.u32 %v3549_v22, %v2647_v23  ;;  %v2714_v23 = vor.u32 %v3565_v14, %v2711_v15 }
  0x53   : > { %800 = vmatpush.bf16.msrb.mxu2 %v3593_v29  ;;  %751 = vmatpush.bf16.msrb.mxu1 %v3585_v30  ;;  %v2654_v29 = vor.u32 %v3552_v25, %v2653_v24  ;;  %v2658_v30 = vor.u32 %v3550_v26, %v2655_v27  ;;  %v3724_v27 = vld [vmem:[%s4783_s1 + $0x2b8] sm:$0xff] }
  0x54   : > { %849 = vmatpush.bf16.msrb.mxu3 %v3601_v31  ;;  %v3656_v31 = vld [vmem:[%s4783_s1 + $0x198] sm:$0xff] }
  0x56   : > { %722 = vmatmul.bf16.gmra.mxu1 %v2662_v41  ;;  %732 = vmatmul.bf16.gmra.mxu2 %v2694_v42  ;;  %v2670_v41 = vor.u32 %v3556_v37, %v2669_v36  ;;  %v2733_v36 = vld [vmem:[%s3974_s9 + $0x2a8] sm:$0xf]  ;;  %v3572_v37 = vld [vmem:[%s3974_s9 + $0x2d4] sm:$0xf0] }
  0x57   : > { %801 = vmatpush.bf16.msrb.mxu2 %v3592_v38  ;;  %752 = vmatpush.bf16.msrb.mxu1 %v3584_v39  ;;  %v3554_v38 = vld [vmem:[%s3974_s9 + $0x12c] sm:$0xf]  ;;  %v2671_v39 = vld [vmem:[%s3974_s9 + $0x158] sm:$0xf0] }
  0x58   : > { %850 = vmatpush.bf16.msrb.mxu3 %v3600_v40  ;;  %712 = vmatmul.bf16.gmra.mxu0 %v2630_v49  ;;  %v2666_v40 = vor.u32 %v3553_v34, %v2663_v35  ;;  %v2674_v42 = vor.u32 %v3554_v38, %v2671_v39  ;;  %v3560_v49 = vld [vmem:[%s3974_s9 + $0x1b4] sm:$0xf0]  ;;  %v3569_v34 = vld [vmem:[%s3974_s9 + $0x2a4] sm:$0xf]  ;;  %v2727_v35 = vld [vmem:[%s3974_s9 + $0x2d0] sm:$0xf0] }
  0x59   : > { %742 = vmatmul.bf16.gmra.mxu3 %v2726_v43  ;;  %v3655_v43 = vld [vmem:[%s4783_s1 + $0x190] sm:$0xff]  ;;  %v3570_v38 = vld [vmem:[%s3974_s9 + $0x2ac] sm:$0xf]  ;;  %v2735_v39 = vld [vmem:[%s3974_s9 + $0x2d8] sm:$0xf0] }
  0x5b   : > { %802 = vmatpush.bf16.msrb.mxu2 %v3591_v46  ;;  %753 = vmatpush.bf16.msrb.mxu1 %v3583_v47  ;;  %v3557_v46 = vld [vmem:[%s3974_s9 + $0x184] sm:$0xf]  ;;  %v2679_v47 = vld [vmem:[%s3974_s9 + $0x1b0] sm:$0xf0] }
  0x5c   : > { %851 = vmatpush.bf16.msrb.mxu3 %v3599_v48  ;;  %v2685_v48 = vld [vmem:[%s3974_s9 + $0x188] sm:$0xf] }
  0x5f   : > { %803 = vmatpush.bf16.msrb.mxu2 %v3590_v50  ;;  %754 = vmatpush.bf16.msrb.mxu1 %v3582_v51  ;;  %v3558_v50 = vld [vmem:[%s3974_s9 + $0x18c] sm:$0xf]  ;;  %v2687_v51 = vld [vmem:[%s3974_s9 + $0x1b8] sm:$0xf0] }
  0x60   : > { %852 = vmatpush.bf16.msrb.mxu3 %v3598_v52  ;;  %v2682_v52 = vor.u32 %v3557_v46, %v2679_v47  ;;  %v2734_v46 = vor.u32 %v3572_v37, %v2733_v36 }
  0x63   : > { %804 = vmatpush.bf16.msrb.mxu2 %v3589_v53  ;;  %755 = vmatpush.bf16.msrb.mxu1 %v3581_v54  ;;  %v2686_v53 = vor.u32 %v3560_v49, %v2685_v48  ;;  %v3644_v54 = vld [vmem:[%s4783_s1 + $0x138] sm:$0xff]  ;;  %v2738_v48 = vor.u32 %v3570_v38, %v2735_v39  ;;  %v3723_v49 = vld [vmem:[%s4783_s1 + $0x2b0] sm:$0xff] }
  0x64   : > { %853 = vmatpush.bf16.msrb.mxu3 %v3597_v55  ;;  %v2690_v55 = vor.u32 %v3558_v50, %v2687_v51  ;;  %1344 = vmatpush.bf16.msrb.mxu0 %v3644_v54  ;;  %v3731_v50 = vld [vmem:[%s4783_s1 + $0x2f0] sm:$0xff] }
  0x65   : > { %v3707_v54 = vld [vmem:[%s4783_s1 + $0x230] sm:$0xff] }
  0x66   : > { %756 = vmatmul.bf16.vlgmr.msrb.gmra.mxu1 %v2618_v1  ;;  %805 = vmatmul.bf16.vlgmr.msrb.gmra.mxu2 %v2622_v2  ;;  %v3564_v1 = vld [vmem:[%s3974_s9 + $0x214] sm:$0xf0]  ;;  %v3562_v2 = vld [vmem:[%s3974_s9 + $0x1ec] sm:$0xf] }
  0x67   : > { %1442 = vmatpush.bf16.msra.mxu2 %v3660_v58  ;;  %1393 = vmatpush.bf16.msra.mxu1 %v3652_v62  ;;  %v3662_v58 = vld [vmem:[%s4783_s1 + $0x1c8] sm:$0xff]  ;;  %v3561_v62 = vld [vmem:[%s3974_s9 + $0x1e4] sm:$0xf] }
  0x68   : > { %1491 = vmatpush.bf16.msra.mxu3 %v3668_v59  ;;  %1345 = vmatpush.bf16.msrb.mxu0 %v3643_v56  ;;  %v3646_v59 = vld [vmem:[%s4783_s1 + $0x148] sm:$0xff]  ;;  %v3605_v56 = vld [vmem:[%s3974_s9 + $0x14] sm:$0xf] }
  0x69   : > { %854 = vmatmul.bf16.vlgmr.msrb.gmra.mxu3 %v2626_v3  ;;  %v2703_v3 = vld [vmem:[%s3974_s9 + $0x218] sm:$0xf0] }
  0x6b   : > { %1443 = vmatpush.bf16.msra.mxu2 %v3659_v4  ;;  %1394 = vmatpush.bf16.msra.mxu1 %v3651_v6  ;;  %v2698_v4 = vor.u32 %v3561_v62, %v2695_v63  ;;  %v3640_v6 = vld [vmem:[%s4783_s1 + $0x118] sm:$0xff]  ;;  %v2943_v62 = vld [vmem:[%s3974_s9 + $0x48] sm:$0xf0]  ;;  %v2965_v63 = vld [vmem:[%s3974_s9 + $0xd0] sm:$0xf] }
  0x6c   : > { %1492 = vmatpush.bf16.msra.mxu3 %v3667_v5  ;;  %1346 = vmatpush.bf16.msrb.mxu0 %v3642_v60  ;;  %v2702_v5 = vor.u32 %v3564_v1, %v2701_v0  ;;  %v3608_v60 = vld [vmem:[%s3974_s9 + $0x44] sm:$0xf0]  ;;  %v3615_v0 = vld [vmem:[%s3974_s9 + $0xfc] sm:$0xf0] }
  0x6f   : > { %1444 = vmatpush.bf16.msra.mxu2 %v3658_v7  ;;  %1395 = vmatpush.bf16.msra.mxu1 %v3650_v9  ;;  %v2706_v7 = vor.u32 %v3562_v2, %v2703_v3  ;;  %v3653_v9 = vld [vmem:[%s4783_s1 + $0x180] sm:$0xff]  ;;  %v2966_v2 = vor.u32 %v3615_v0, %v2965_v63  ;;  %v3614_v63 = vld [vmem:[%s3974_s9 + $0xdc] sm:$0xf] }
  0x70   : > { %1493 = vmatpush.bf16.msra.mxu3 %v3666_v8  ;;  %1347 = vmatpush.bf16.msrb.mxu0 %v3641_v61  ;;  %v3639_v8 = vld [vmem:[%s4783_s1 + $0x110] sm:$0xff]  ;;  %v3606_v61 = vld [vmem:[%s3974_s9 + $0x1c] sm:$0xf] }
  0x73   : > { %1445 = vmatpush.bf16.msra.mxu2 %v3657_v19  ;;  %1396 = vmatpush.bf16.msra.mxu1 %v3649_v21  ;;  %v2719_v19 = vld [vmem:[%s3974_s9 + $0x278] sm:$0xf0]  ;;  %v3607_v21 = vld [vmem:[%s3974_s9 + $0x3c] sm:$0xf0] }
  0x74   : > { %1494 = vmatpush.bf16.msra.mxu3 %v3665_v20  ;;  %1348 = vmatpush.bf16.msrb.mxu0 %v3640_v6  ;;  %v2933_v20 = vld [vmem:[%s3974_s9 + $0x10] sm:$0xf] }
  0x75   : > { %v2934_v22 = vor.u32 %v3607_v21, %v2933_v20  ;;  %v2951_v20 = vld [vmem:[%s3974_s9 + $0xa0] sm:$0xf0]  ;;  %v2957_v21 = vld [vmem:[%s3974_s9 + $0x78] sm:$0xf] }
  0x76   : > { %761 = vmatmul.bf16.gmra.mxu1 %v2634_v16  ;;  %810 = vmatmul.bf16.gmra.mxu2 %v2638_v17  ;;  %v2717_v16 = vld [vmem:[%s3974_s9 + $0x248] sm:$0xf]  ;;  %v3568_v17 = vld [vmem:[%s3974_s9 + $0x274] sm:$0xf0] }
  0x77   : > { %1446 = vmatpush.bf16.msra.mxu2 %v3656_v31  ;;  %1397 = vmatpush.bf16.msra.mxu1 %v3648_v33  ;;  %v2718_v24 = vor.u32 %v3568_v17, %v2717_v16  ;;  %v3716_v33 = vld [vmem:[%s4783_s1 + $0x278] sm:$0xff]  ;;  %v3706_v17 = vld [vmem:[%s4783_s1 + $0x228] sm:$0xff] }
  0x78   : > { %1495 = vmatpush.bf16.msra.mxu3 %v3664_v32  ;;  %1349 = vmatpush.bf16.msrb.mxu0 %v3639_v8  ;;  %v3708_v32 = vld [vmem:[%s4783_s1 + $0x238] sm:$0xff] }
  0x79   : > { %859 = vmatmul.bf16.gmra.mxu3 %v2642_v18  ;;  %v3566_v18 = vld [vmem:[%s3974_s9 + $0x24c] sm:$0xf] }
  0x7a   : > { %v2722_v26 = vor.u32 %v3566_v18, %v2719_v19  ;;  %v3714_v18 = vld [vmem:[%s4783_s1 + $0x268] sm:$0xff]  ;;  %v3609_v19 = vld [vmem:[%s3974_s9 + $0x74] sm:$0xf] }
  0x7b   : > { %1447 = vmatpush.bf16.msra.mxu2 %v3655_v43  ;;  %1398 = vmatpush.bf16.msra.mxu1 %v3647_v45  ;;  %v2730_v45 = vor.u32 %v3569_v34, %v2727_v35  ;;  %v2954_v36 = vor.u32 %v3609_v19, %v2951_v20 }
  0x7c   : > { %1496 = vmatpush.bf16.msra.mxu3 %v3663_v44  ;;  %1350 = vmatpush.bf16.msrb.mxu0 %v3638_v12 }
  0x7f   : > { %1448 = vmatpush.bf16.msra.mxu2 %v3654_v57  ;;  %1399 = vmatpush.bf16.msra.mxu1 %v3646_v59  ;;  %v2935_v57 = vld [vmem:[%s3974_s9 + $0x40] sm:$0xf0]  ;;  %v2941_v59 = vld [vmem:[%s3974_s9 + $0x18] sm:$0xf] }
  0x80   : > { %1497 = vmatpush.bf16.msra.mxu3 %v3662_v58  ;;  %1351 = vmatpush.bf16.msrb.mxu0 %v3637_v13 }
  0x83   : > { %1449 = vmatpush.bf16.msra.mxu2 %v3653_v9  ;;  %1400 = vmatpush.bf16.msra.mxu1 %v3645_v11  ;;  %v3722_v9 = vld [vmem:[%s4783_s1 + $0x2a8] sm:$0xff] }
  0x84   : > { %1498 = vmatpush.bf16.msra.mxu3 %v3661_v10  ;;  %1352 = vmatmul.bf16.vlgmr.msrb.gmra.mxu0 %v2934_v22  ;;  %v3730_v10 = vld [vmem:[%s4783_s1 + $0x2e8] sm:$0xff] }
  0x85   : > { %1989 = vmatpush.bf16.msra.mxu0 %v3708_v32  ;;  %v3612_v22 = vld [vmem:[%s3974_s9 + $0xa4] sm:$0xf0] }
  0x86   : > { %766 = vmatmul.bf16.gmra.mxu1 %v2650_v28  ;;  %815 = vmatmul.bf16.gmra.mxu2 %v2654_v29  ;;  %v3732_v28 = vld [vmem:[%s4783_s1 + $0x2f8] sm:$0xff]  ;;  %v2958_v37 = vor.u32 %v3612_v22, %v2957_v21 }
  0x87   : > { %2087 = vmatpush.bf16.msrb.mxu2 %v3724_v27  ;;  %2038 = vmatpush.bf16.msrb.mxu1 %v3716_v33  ;;  %v2981_v27 = vld [vmem:[%s3974_s9 + $0x130] sm:$0xf] }
  0x88   : > { %2136 = vmatpush.bf16.msrb.mxu3 %v3732_v28  ;;  %v3619_v28 = vld [vmem:[%s3974_s9 + $0x15c] sm:$0xf0] }
  0x89   : > { %864 = vmatmul.bf16.gmra.mxu3 %v2658_v30  ;;  %1990 = vmatpush.bf16.msra.mxu0 %v3707_v54  ;;  %v2982_v33 = vor.u32 %v3619_v28, %v2981_v27  ;;  %v3617_v27 = vld [vmem:[%s3974_s9 + $0x134] sm:$0xf]  ;;  %v2983_v28 = vld [vmem:[%s3974_s9 + $0x160] sm:$0xf0] }
  0x8b   : > { %2088 = vmatpush.bf16.msrb.mxu2 %v3723_v49 }
  0x8c   : > { %2137 = vmatpush.bf16.msrb.mxu3 %v3731_v50 }
  0x8d   : > { %1991 = vmatpush.bf16.msra.mxu0 %v3706_v17  ;;  %v3720_v17 = vld [vmem:[%s4783_s1 + $0x298] sm:$0xff] }
  0x8f   : > { %2089 = vmatpush.bf16.msrb.mxu2 %v3722_v9 }
  0x90   : > { %2138 = vmatpush.bf16.msrb.mxu3 %v3730_v10 }
  0x96   : > { %771 = vmatmul.bf16.gmra.mxu1 %v2666_v40  ;;  %820 = vmatmul.bf16.gmra.mxu2 %v2670_v41  ;;  %v2949_v40 = vld [vmem:[%s3974_s9 + $0x70] sm:$0xf]  ;;  %v3611_v41 = vld [vmem:[%s3974_s9 + $0x9c] sm:$0xf0] }
  0x97   : > { %v2950_v43 = vor.u32 %v3611_v41, %v2949_v40 }
  0x99   : > { %869 = vmatmul.bf16.gmra.mxu3 %v2674_v42  ;;  %1357 = vmatmul.bf16.gmra.mxu0 %v2950_v43 }
  0xa6   : > { %776 = vmatmul.bf16.gmra.mxu1 %v2682_v52  ;;  %825 = vmatmul.bf16.gmra.mxu2 %v2686_v53 }
  0xa9   : > { %874 = vmatmul.bf16.gmra.mxu3 %v2690_v55  ;;  %v3715_v55 = vld [vmem:[%s4783_s1 + $0x270] sm:$0xff]  ;;  %1362 = vmatmul.bf16.gmra.mxu0 %v2966_v2  ;;  %v2975_v2 = vld [vmem:[%s3974_s9 + $0x108] sm:$0xf0] }
  0xaa   : > { %2039 = vmatpush.bf16.msrb.mxu1 %v3715_v55 }
  0xae   : > { %2040 = vmatpush.bf16.msrb.mxu1 %v3714_v18  ;;  %v3728_v18 = vld [vmem:[%s4783_s1 + $0x2d8] sm:$0xff] }
  0xb6   : > { %781 = vmatmul.bf16.gmra.mxu1 %v2698_v4  ;;  %830 = vmatmul.bf16.gmra.mxu2 %v2702_v5  ;;  %v2938_v4 = vor.u32 %v3605_v56, %v2935_v57  ;;  %v2942_v5 = vor.u32 %v3608_v60, %v2941_v59  ;;  %v3705_v56 = vld [vmem:[%s4783_s1 + $0x220] sm:$0xff]  ;;  %v3613_v59 = vld [vmem:[%s3974_s9 + $0xd4] sm:$0xf] }
  0xb7   : > { %v3713_v57 = vld [vmem:[%s4783_s1 + $0x260] sm:$0xff]  ;;  %1992 = vmatpush.bf16.msra.mxu0 %v3705_v56  ;;  %v3727_v56 = vld [vmem:[%s4783_s1 + $0x2d0] sm:$0xff] }
  0xb8   : > { %v2967_v60 = vld [vmem:[%s3974_s9 + $0x100] sm:$0xf0]  ;;  %2041 = vmatpush.bf16.msrb.mxu1 %v3713_v57 }
  0xb9   : > { %879 = vmatmul.bf16.gmra.mxu3 %v2706_v7  ;;  %v2946_v7 = vor.u32 %v3606_v61, %v2943_v62  ;;  %1367 = vmatmul.bf16.gmra.mxu0 %v2982_v33  ;;  %v2973_v61 = vld [vmem:[%s3974_s9 + $0xd8] sm:$0xf]  ;;  %v3616_v62 = vld [vmem:[%s3974_s9 + $0x104] sm:$0xf0]  ;;  %v2970_v10 = vor.u32 %v3613_v59, %v2967_v60 }
  0xba   : > { %v3620_v33 = vld [vmem:[%s3974_s9 + $0x164] sm:$0xf0] }
  0xc3   : > { %v4232_v25 = vpop.f32.mrf.mxu1 }
  0xc5   : > { %v708_v58 = vpop.f32.mrf.mxu0 }
  0xc6   : > { %786 = vmatmul.bf16.gmra.mxu1 %v2714_v23  ;;  %835 = vmatmul.bf16.gmra.mxu2 %v2718_v24  ;;  %v3610_v23 = vld [vmem:[%s3974_s9 + $0x7c] sm:$0xf] }
  0xc9   : > { %884 = vmatmul.bf16.gmra.mxu3 %v2722_v26  ;;  %v4240_v29 = vpop.f32.mrf.mxu2  ;;  %v2959_v26 = vld [vmem:[%s3974_s9 + $0xa8] sm:$0xf0] }
  0xca   : > { %v2962_v40 = vor.u32 %v3610_v23, %v2959_v26  ;;  %v3712_v26 = vld [vmem:[%s4783_s1 + $0x258] sm:$0xff] }
  0xcb   : > { %v4244_v31 = vpop.f32.mrf.mxu1  ;;  %2042 = vmatpush.bf16.msrb.mxu1 %v3712_v26 }
  0xcc   : > { %v4242_v30 = vpop.f32.mrf.mxu3 }
  0xcd   : > { %v710_v12 = vpop.f32.mrf.mxu0 }
  0xd1   : > { %v4260_v42 = vpop.f32.mrf.mxu2 }
  0xd3   : > { %v4264_v47 = vpop.f32.mrf.mxu1 }
  0xd4   : > { %v4262_v44 = vpop.f32.mrf.mxu3 }
  0xd5   : > { %v713_v38 = vpop.f32.mrf.mxu0 }
  0xd6   : > { %791 = vmatmul.bf16.gmra.mxu1 %v2730_v45  ;;  %840 = vmatmul.bf16.gmra.mxu2 %v2734_v46  ;;  %v3721_v45 = vld [vmem:[%s4783_s1 + $0x2a0] sm:$0xff] }
  0xd7   : > { %v3729_v46 = vld [vmem:[%s4783_s1 + $0x2e0] sm:$0xff]  ;;  %2090 = vmatpush.bf16.msrb.mxu2 %v3721_v45 }
  0xd8   : > { %2139 = vmatpush.bf16.msrb.mxu3 %v3729_v46 }
  0xd9   : > { %889 = vmatmul.bf16.gmra.mxu3 %v2738_v48  ;;  %v4272_v51 = vpop.f32.mrf.mxu2 }
  0xdb   : > { %v4276_v53 = vpop.f32.mrf.mxu1  ;;  %2091 = vmatpush.bf16.msrb.mxu2 %v3720_v17 }
  0xdc   : > { %v4274_v52 = vpop.f32.mrf.mxu3  ;;  %2140 = vmatpush.bf16.msrb.mxu3 %v3728_v18 }
  0xe0   : > { %2141 = vmatpush.bf16.msrb.mxu3 %v3727_v56 }
  0xe1   : > { %v4292_v1 = vpop.f32.mrf.mxu2 }
  0xe3   : > { %v757_v6 = vpop.f32.mrf.mxu1 }
  0xe4   : > { %v4294_v3 = vpop.f32.mrf.mxu3  ;;  %v758_v8 = vadd.f32 %v757_v6, %v708_v58  ;;  %v715_v58 = vpop.f32.mrf.mxu0 }
  0xe6   : > { %1401 = vmatmul.bf16.vlgmr.msra.gmra.mxu1 %v2938_v4  ;;  %1450 = vmatmul.bf16.vlgmr.msra.gmra.mxu2 %v2942_v5  ;;  %v2997_v4 = vld [vmem:[%s3974_s9 + $0x190] sm:$0xf]  ;;  %v3623_v5 = vld [vmem:[%s3974_s9 + $0x1bc] sm:$0xf0] }
  0xe9   : > { %1499 = vmatmul.bf16.vlgmr.msra.gmra.mxu3 %v2946_v7  ;;  %v806_v11 = vpop.f32.mrf.mxu2  ;;  %v2998_v7 = vor.u32 %v3623_v5, %v2997_v4  ;;  %v3005_v4 = vld [vmem:[%s3974_s9 + $0x198] sm:$0xf]  ;;  %v3624_v5 = vld [vmem:[%s3974_s9 + $0x1c4] sm:$0xf0] }
  0xea   : > { %v807_v13 = vadd.f32 %v806_v11, %v758_v8  ;;  %v2974_v11 = vor.u32 %v3616_v62, %v2973_v61  ;;  %v3703_v62 = vld [vmem:[%s4783_s1 + $0x210] sm:$0xff] }
  0xeb   : > { %v759_v15 = vpop.f32.mrf.mxu1  ;;  %1372 = vmatmul.bf16.gmra.mxu0 %v2998_v7  ;;  %v3007_v7 = vld [vmem:[%s3974_s9 + $0x1c8] sm:$0xf0] }
  0xec   : > { %v855_v14 = vpop.f32.mrf.mxu3  ;;  %v760_v24 = vadd.f32 %v759_v15, %v710_v12 }
  0xed   : > { %v4302_v16 = vadd.f32 %v855_v14, %v807_v13  ;;  %v2978_v13 = vor.u32 %v3614_v63, %v2975_v2  ;;  %v3711_v63 = vld [vmem:[%s4783_s1 + $0x250] sm:$0xff]  ;;  %v2999_v2 = vld [vmem:[%s3974_s9 + $0x1c0] sm:$0xf0] }
  0xee   : > { %2043 = vmatpush.bf16.msrb.mxu1 %v3711_v63 }
  0xf1   : > { %v808_v32 = vpop.f32.mrf.mxu2 }
  0xf2   : > { %v809_v34 = vadd.f32 %v808_v32, %v760_v24  ;;  %v3704_v24 = vld [vmem:[%s4783_s1 + $0x218] sm:$0xff] }
  0xf3   : > { %v762_v39 = vpop.f32.mrf.mxu1  ;;  %1993 = vmatpush.bf16.msra.mxu0 %v3704_v24  ;;  %v2989_v32 = vld [vmem:[%s3974_s9 + $0x138] sm:$0xf] }
  0xf4   : > { %v857_v35 = vpop.f32.mrf.mxu3  ;;  %v763_v43 = vadd.f32 %v762_v39, %v713_v38  ;;  %v2990_v45 = vor.u32 %v3620_v33, %v2989_v32  ;;  %v3702_v32 = vld [vmem:[%s4783_s1 + $0x208] sm:$0xff]  ;;  %v3625_v33 = vld [vmem:[%s3974_s9 + $0x1f4] sm:$0xf] }
  0xf5   : > { %v4318_v41 = vadd.f32 %v857_v35, %v809_v34  ;;  %v3618_v34 = vld [vmem:[%s3974_s9 + $0x13c] sm:$0xf]  ;;  %v2991_v35 = vld [vmem:[%s3974_s9 + $0x168] sm:$0xf0] }
  0xf6   : > { %1406 = vmatmul.bf16.gmra.mxu1 %v2954_v36  ;;  %1455 = vmatmul.bf16.gmra.mxu2 %v2958_v37  ;;  %v3013_v36 = vld [vmem:[%s3974_s9 + $0x1f0] sm:$0xf]  ;;  %v3627_v37 = vld [vmem:[%s3974_s9 + $0x21c] sm:$0xf0] }
  0xf7   : > { %1994 = vmatpush.bf16.msra.mxu0 %v3703_v62 }
  0xf9   : > { %1504 = vmatmul.bf16.gmra.mxu3 %v2962_v40  ;;  %v811_v48 = vpop.f32.mrf.mxu2 }
  0xfa   : > { %v812_v49 = vadd.f32 %v811_v48, %v763_v43  ;;  %v2986_v43 = vor.u32 %v3617_v27, %v2983_v28  ;;  %v2994_v48 = vor.u32 %v3618_v34, %v2991_v35  ;;  %v3015_v34 = vld [vmem:[%s3974_s9 + $0x220] sm:$0xf0]  ;;  %v3021_v35 = vld [vmem:[%s3974_s9 + $0x1f8] sm:$0xf] }
  0xfb   : > { %v764_v54 = vpop.f32.mrf.mxu1  ;;  %1995 = vmatpush.bf16.msra.mxu0 %v3702_v32 }
  0xfc   : > { %v860_v50 = vpop.f32.mrf.mxu3  ;;  %v765_v0 = vadd.f32 %v764_v54, %v715_v58  ;;  %v3719_v54 = vld [vmem:[%s4783_s1 + $0x290] sm:$0xff] }
  0xfd   : > { %v4326_v55 = vadd.f32 %v860_v50, %v812_v49  ;;  %2092 = vmatpush.bf16.msrb.mxu2 %v3719_v54 }
 0x101   : > { %v813_v6 = vpop.f32.mrf.mxu2 }
 0x102   : > { %v814_v8 = vadd.f32 %v813_v6, %v765_v0  ;;  %v3621_v0 = vld [vmem:[%s3974_s9 + $0x194] sm:$0xf]  ;;  %v3622_v6 = vld [vmem:[%s3974_s9 + $0x19c] sm:$0xf] }
 0x103   : > { %v767_v12 = vpop.f32.mrf.mxu1  ;;  %v3010_v18 = vor.u32 %v3622_v6, %v3007_v7  ;;  %v3031_v6 = vld [vmem:[%s3974_s9 + $0x280] sm:$0xf0]  ;;  %v3037_v7 = vld [vmem:[%s3974_s9 + $0x258] sm:$0xf] }
 0x104   : > { %v862_v9 = vpop.f32.mrf.mxu3  ;;  %v768_v15 = vadd.f32 %v767_v12, %v4232_v25 }
 0x105   : > { %v4342_v14 = vadd.f32 %v862_v9, %v814_v8  ;;  %v3029_v8 = vld [vmem:[%s3974_s9 + $0x250] sm:$0xf]  ;;  %v3631_v9 = vld [vmem:[%s3974_s9 + $0x27c] sm:$0xf0] }
 0x106   : > { %1411 = vmatmul.bf16.gmra.mxu1 %v2970_v10  ;;  %1460 = vmatmul.bf16.gmra.mxu2 %v2974_v11 }
 0x109   : > { %1509 = vmatmul.bf16.gmra.mxu3 %v2978_v13  ;;  %v816_v19 = vpop.f32.mrf.mxu2  ;;  %v3002_v13 = vor.u32 %v3621_v0, %v2999_v2 }
 0x10a   : > { %v817_v25 = vadd.f32 %v816_v19, %v768_v15  ;;  %v3006_v15 = vor.u32 %v3624_v5, %v3005_v4  ;;  %v3701_v4 = vld [vmem:[%s4783_s1 + $0x200] sm:$0xff]  ;;  %v3629_v5 = vld [vmem:[%s3974_s9 + $0x254] sm:$0xf] }
 0x10b   : > { %v769_v21 = vpop.f32.mrf.mxu1  ;;  %1996 = vmatpush.bf16.msra.mxu0 %v3701_v4 }
 0x10c   : > { %v865_v20 = vpop.f32.mrf.mxu3  ;;  %v770_v23 = vadd.f32 %v769_v21, %v4244_v31  ;;  %v3014_v31 = vor.u32 %v3627_v37, %v3013_v36  ;;  %v3628_v36 = vld [vmem:[%s3974_s9 + $0x224] sm:$0xf0]  ;;  %v3626_v37 = vld [vmem:[%s3974_s9 + $0x1fc] sm:$0xf] }
 0x10d   : > { %v4351_v22 = vadd.f32 %v865_v20, %v817_v25  ;;  %v3718_v25 = vld [vmem:[%s4783_s1 + $0x288] sm:$0xff]  ;;  %v3022_v54 = vor.u32 %v3628_v36, %v3021_v35  ;;  %v3633_v36 = vld [vmem:[%s3974_s9 + $0x2b4] sm:$0xf] }
 0x10e   : > { %1377 = vmatmul.bf16.gmra.mxu0 %v3014_v31  ;;  %v3726_v20 = vld [vmem:[%s4783_s1 + $0x2c8] sm:$0xff]  ;;  %2093 = vmatpush.bf16.msrb.mxu2 %v3718_v25 }
 0x10f   : > { %2142 = vmatpush.bf16.msrb.mxu3 %v3726_v20  ;;  %v3023_v31 = vld [vmem:[%s3974_s9 + $0x228] sm:$0xf0]  ;;  %v3034_v20 = vor.u32 %v3629_v5, %v3031_v6  ;;  %v3669_v6 = vld [vmem:[%s3974_s9 + $0x24] sm:$0xf] }
 0x111   : > { %v818_v38 = vpop.f32.mrf.mxu2 }
 0x112   : > { %v819_v39 = vadd.f32 %v818_v38, %v770_v23 }
 0x113   : > { %v772_v46 = vpop.f32.mrf.mxu1 }
 0x114   : > { %v867_v40 = vpop.f32.mrf.mxu3  ;;  %v773_v50 = vadd.f32 %v772_v46, %v4264_v47 }
 0x115   : > { %v4368_v49 = vadd.f32 %v867_v40, %v819_v39  ;;  %v3045_v39 = vld [vmem:[%s3974_s9 + $0x2b0] sm:$0xf]  ;;  %v3635_v40 = vld [vmem:[%s3974_s9 + $0x2dc] sm:$0xf0] }
 0x116   : > { %1416 = vmatmul.bf16.gmra.mxu1 %v2986_v43  ;;  %1465 = vmatmul.bf16.gmra.mxu2 %v2990_v45  ;;  %v3046_v45 = vor.u32 %v3635_v40, %v3045_v39  ;;  %v3634_v39 = vld [vmem:[%s3974_s9 + $0x2bc] sm:$0xf] }
 0x119   : > { %1514 = vmatmul.bf16.gmra.mxu3 %v2994_v48  ;;  %v821_v57 = vpop.f32.mrf.mxu2 }
 0x11a   : > { %v822_v47 = vadd.f32 %v821_v57, %v773_v50  ;;  %v3018_v50 = vor.u32 %v3625_v33, %v3015_v34  ;;  %v3026_v57 = vor.u32 %v3626_v37, %v3023_v31  ;;  %v3047_v37 = vld [vmem:[%s3974_s9 + $0x2e0] sm:$0xf0]  ;;  %v3636_v31 = vld [vmem:[%s3974_s9 + $0x2e4] sm:$0xf0] }
 0x11b   : > { %v774_v59 = vpop.f32.mrf.mxu1 }
 0x11c   : > { %v870_v58 = vpop.f32.mrf.mxu3  ;;  %v775_v61 = vadd.f32 %v774_v59, %v4276_v53  ;;  %v3030_v53 = vor.u32 %v3631_v9, %v3029_v8  ;;  %v3632_v8 = vld [vmem:[%s3974_s9 + $0x284] sm:$0xf0]  ;;  %v3630_v9 = vld [vmem:[%s3974_s9 + $0x25c] sm:$0xf] }
 0x11d   : > { %v4377_v60 = vadd.f32 %v870_v58, %v822_v47  ;;  %v3725_v58 = vld [vmem:[%s4783_s1 + $0x2c0] sm:$0xff] }
 0x11e   : > { %1382 = vmatmul.bf16.gmra.mxu0 %v3030_v53  ;;  %2143 = vmatpush.bf16.msrb.mxu3 %v3725_v58  ;;  %v3039_v53 = vld [vmem:[%s3974_s9 + $0x288] sm:$0xf0] }
 0x121   : > { %v823_v10 = vpop.f32.mrf.mxu2 }
 0x122   : > { %v824_v11 = vadd.f32 %v823_v10, %v775_v61 }
 0x123   : > { %v777_v17 = vpop.f32.mrf.mxu1 }
 0x124   : > { %v872_v12 = vpop.f32.mrf.mxu3  ;;  %v778_v21 = vadd.f32 %v777_v17, %v4240_v29  ;;  %v3710_v29 = vld [vmem:[%s4783_s1 + $0x248] sm:$0xff] }
 0x125   : > { %v4394_v19 = vadd.f32 %v872_v12, %v824_v11  ;;  %2044 = vmatpush.bf16.msrb.mxu1 %v3710_v29  ;;  %v4444_v11 = vpop.f32.mrf.mxu0  ;;  %v3253_v12 = vld [vmem:[%s3974_s9 + $0x20] sm:$0xf] }
 0x126   : > { %1421 = vmatmul.bf16.gmra.mxu1 %v3002_v13  ;;  %1470 = vmatmul.bf16.gmra.mxu2 %v3006_v15  ;;  %v3671_v13 = vld [vmem:[%s3974_s9 + $0x4c] sm:$0xf0] }
 0x127   : > { %v3254_v17 = vor.u32 %v3671_v13, %v3253_v12  ;;  %v3263_v12 = vld [vmem:[%s3974_s9 + $0x58] sm:$0xf0] }
 0x129   : > { %1519 = vmatmul.bf16.gmra.mxu3 %v3010_v18  ;;  %v826_v23 = vpop.f32.mrf.mxu2 }
 0x12a   : > { %v827_v24 = vadd.f32 %v826_v23, %v778_v21  ;;  %v3038_v21 = vor.u32 %v3632_v8, %v3037_v7  ;;  %v3255_v7 = vld [vmem:[%s3974_s9 + $0x50] sm:$0xf0]  ;;  %v3261_v8 = vld [vmem:[%s3974_s9 + $0x28] sm:$0xf] }
 0x12b   : > { %v779_v27 = vpop.f32.mrf.mxu1 }
 0x12c   : > { %v875_v26 = vpop.f32.mrf.mxu3  ;;  %v780_v38 = vadd.f32 %v779_v27, %v4260_v42  ;;  %v3717_v42 = vld [vmem:[%s4783_s1 + $0x280] sm:$0xff] }
 0x12d   : > { %v4403_v28 = vadd.f32 %v875_v26, %v827_v24  ;;  %2094 = vmatpush.bf16.msrb.mxu2 %v3717_v42  ;;  %v3042_v24 = vor.u32 %v3630_v9, %v3039_v53  ;;  %v4451_v27 = vpop.f32.mrf.mxu0  ;;  %v3672_v9 = vld [vmem:[%s3974_s9 + $0x54] sm:$0xf0] }
 0x12e   : > { %1387 = vmatmul.bf16.gmra.mxu0 %v3046_v45 }
 0x131   : > { %v828_v43 = vpop.f32.mrf.mxu2 }
 0x132   : > { %v829_v46 = vadd.f32 %v828_v43, %v780_v38  ;;  %v3053_v38 = vld [vmem:[%s3974_s9 + $0x2b8] sm:$0xf]  ;;  %v3055_v43 = vld [vmem:[%s3974_s9 + $0x2e8] sm:$0xf0] }
 0x133   : > { %v782_v56 = vpop.f32.mrf.mxu1  ;;  %v3054_v42 = vor.u32 %v3636_v31, %v3053_v38  ;;  %v3673_v31 = vld [vmem:[%s3974_s9 + $0x84] sm:$0xf] }
 0x134   : > { %v877_v48 = vpop.f32.mrf.mxu3  ;;  %v783_v59 = vadd.f32 %v782_v56, %v4272_v51  ;;  %v3709_v51 = vld [vmem:[%s4783_s1 + $0x240] sm:$0xff] }
 0x135   : > { %v4420_v47 = vadd.f32 %v877_v48, %v829_v46  ;;  %2045 = vmatpush.bf16.msrb.mxu1 %v3709_v51  ;;  %v4462_v45 = vpop.f32.mrf.mxu0  ;;  %v3675_v46 = vld [vmem:[%s3974_s9 + $0xac] sm:$0xf0] }
 0x136   : > { %1426 = vmatmul.bf16.gmra.mxu1 %v3018_v50  ;;  %1475 = vmatmul.bf16.gmra.mxu2 %v3022_v54 }
 0x139   : > { %1524 = vmatmul.bf16.gmra.mxu3 %v3026_v57  ;;  %v831_v61 = vpop.f32.mrf.mxu2  ;;  %v3050_v57 = vor.u32 %v3633_v36, %v3047_v37 }
 0x13a   : > { %v832_v62 = vadd.f32 %v831_v61, %v783_v59  ;;  %v3058_v59 = vor.u32 %v3634_v39, %v3055_v43  ;;  %v3271_v39 = vld [vmem:[%s3974_s9 + $0xb0] sm:$0xf0]  ;;  %v3674_v43 = vld [vmem:[%s3974_s9 + $0x8c] sm:$0xf] }
 0x13b   : > { %v784_v0 = vpop.f32.mrf.mxu1 }
 0x13c   : > { %v880_v63 = vpop.f32.mrf.mxu3  ;;  %v785_v10 = vadd.f32 %v784_v0, %v4292_v1 }
 0x13d   : > { %v4429_v2 = vadd.f32 %v880_v63, %v832_v62  ;;  %v4469_v62 = vpop.f32.mrf.mxu0 }
 0x13e   : > { %1997 = vmatmul.bf16.vlgmr.msra.gmra.mxu0 %v3254_v17 }
 0x141   : > { %v833_v15 = vpop.f32.mrf.mxu2 }
 0x142   : > { %v834_v18 = vadd.f32 %v833_v15, %v785_v10  ;;  %v3670_v10 = vld [vmem:[%s3974_s9 + $0x2c] sm:$0xf]  ;;  %v3679_v15 = vld [vmem:[%s3974_s9 + $0x10c] sm:$0xf0] }
 0x143   : > { %v787_v23 = vpop.f32.mrf.mxu1 }
 0x144   : > { %v882_v25 = vpop.f32.mrf.mxu3  ;;  %v788_v26 = vadd.f32 %v787_v23, %v4242_v30  ;;  %v3269_v30 = vld [vmem:[%s3974_s9 + $0x80] sm:$0xf]  ;;  %v3262_v23 = vor.u32 %v3672_v9, %v3261_v8 }
 0x145   : > { %v4448_v1 = vadd.f32 %v882_v25, %v834_v18  ;;  %v3270_v50 = vor.u32 %v3675_v46, %v3269_v30  ;;  %v4480_v13 = vpop.f32.mrf.mxu0  ;;  %v3279_v46 = vld [vmem:[%s3974_s9 + $0xb8] sm:$0xf0] }
 0x146   : > { %1431 = vmatmul.bf16.gmra.mxu1 %v3034_v20  ;;  %1480 = vmatmul.bf16.gmra.mxu2 %v3038_v21  ;;  %v3258_v21 = vor.u32 %v3669_v6, %v3255_v7 }
 0x149   : > { %1529 = vmatmul.bf16.gmra.mxu3 %v3042_v24  ;;  %v836_v32 = vpop.f32.mrf.mxu2 }
 0x14a   : > { %v837_v29 = vadd.f32 %v836_v32, %v788_v26  ;;  %v3266_v26 = vor.u32 %v3670_v10, %v3263_v12  ;;  %v3293_v12 = vld [vmem:[%s3974_s9 + $0xe8] sm:$0xf] }
 0x14b   : > { %v789_v34 = vpop.f32.mrf.mxu1 }
 0x14c   : > { %v885_v33 = vpop.f32.mrf.mxu3  ;;  %v790_v40 = vadd.f32 %v789_v34, %v4262_v44 }
 0x14d   : > { %v4453_v35 = vadd.f32 %v885_v33, %v837_v29  ;;  %v4487_v29 = vpop.f32.mrf.mxu0 }
 0x14e   : > { %2002 = vmatmul.bf16.gmra.mxu0 %v3270_v50  ;;  %v3301_v50 = vld [vmem:[%s3974_s9 + $0x140] sm:$0xf] }
 0x151   : > { %v838_v48 = vpop.f32.mrf.mxu2 }
 0x152   : > { %v839_v54 = vadd.f32 %v838_v48, %v790_v40  ;;  %v3676_v40 = vld [vmem:[%s3974_s9 + $0xb4] sm:$0xf0] }
 0x153   : > { %v792_v58 = vpop.f32.mrf.mxu1 }
 0x154   : > { %v887_v56 = vpop.f32.mrf.mxu3  ;;  %v793_v61 = vadd.f32 %v792_v58, %v4274_v52  ;;  %v3285_v52 = vld [vmem:[%s3974_s9 + $0xe0] sm:$0xf] }
 0x155   : > { %v4466_v44 = vadd.f32 %v887_v56, %v839_v54  ;;  %v3286_v18 = vor.u32 %v3679_v15, %v3285_v52  ;;  %v4497_v48 = vpop.f32.mrf.mxu0  ;;  %v3683_v54 = vld [vmem:[%s3974_s9 + $0x16c] sm:$0xf0]  ;;  %v3680_v52 = vld [vmem:[%s3974_s9 + $0x114] sm:$0xf0]  ;;  %v3678_v15 = vld [vmem:[%s3974_s9 + $0xec] sm:$0xf] }
 0x156   : > { %1436 = vmatmul.bf16.gmra.mxu1 %v3050_v57  ;;  %1485 = vmatmul.bf16.gmra.mxu2 %v3054_v42  ;;  %v3302_v57 = vor.u32 %v3683_v54, %v3301_v50  ;;  %v3303_v50 = vld [vmem:[%s3974_s9 + $0x170] sm:$0xf0]  ;;  %v3309_v54 = vld [vmem:[%s3974_s9 + $0x148] sm:$0xf] }
 0x159   : > { %1534 = vmatmul.bf16.gmra.mxu3 %v3058_v59  ;;  %v841_v63 = vpop.f32.mrf.mxu2  ;;  %v3274_v59 = vor.u32 %v3673_v31, %v3271_v39 }
 0x15a   : > { %v842_v0 = vadd.f32 %v841_v63, %v793_v61 }
 0x15b   : > { %v794_v51 = vpop.f32.mrf.mxu1 }
 0x15c   : > { %v890_v4 = vpop.f32.mrf.mxu3  ;;  %v795_v53 = vadd.f32 %v794_v51, %v4294_v3 }
 0x15d   : > { %v4471_v5 = vadd.f32 %v890_v4, %v842_v0  ;;  %v3282_v0 = vor.u32 %v3674_v43, %v3279_v46  ;;  %v4503_v51 = vpop.f32.mrf.mxu0 }
 0x15e   : > { %2007 = vmatmul.bf16.gmra.mxu0 %v3286_v18  ;;  %v3295_v18 = vld [vmem:[%s3974_s9 + $0x118] sm:$0xf0] }
 0x161   : > { %v843_v17 = vpop.f32.mrf.mxu2 }
 0x162   : > { %v844_v25 = vadd.f32 %v843_v17, %v795_v53  ;;  %v3677_v53 = vld [vmem:[%s3974_s9 + $0xe4] sm:$0xf] }
 0x163   : > { %v1402_v24 = vpop.f32.mrf.mxu1 }
 0x164   : > { %v892_v20 = vpop.f32.mrf.mxu3  ;;  %v1403_v3 = vadd.f32 %v1402_v24, %v4444_v11  ;;  %v3277_v11 = vld [vmem:[%s3974_s9 + $0x88] sm:$0xf] }
 0x165   : > { %v4484_v32 = vadd.f32 %v892_v20, %v844_v25  ;;  %v3278_v61 = vor.u32 %v3676_v40, %v3277_v11  ;;  %v3317_v20 = vld [vmem:[%s3974_s9 + $0x1a0] sm:$0xf] }
 0x166   : > { %2046 = vmatmul.bf16.vlgmr.msrb.gmra.mxu1 %v3258_v21  ;;  %2095 = vmatmul.bf16.vlgmr.msrb.gmra.mxu2 %v3262_v23  ;;  %v3687_v21 = vld [vmem:[%s3974_s9 + $0x1cc] sm:$0xf0] }
 0x167   : > { %v3318_v24 = vor.u32 %v3687_v21, %v3317_v20  ;;  %v3685_v20 = vld [vmem:[%s3974_s9 + $0x1a4] sm:$0xf]  ;;  %v3319_v21 = vld [vmem:[%s3974_s9 + $0x1d0] sm:$0xf0] }
 0x168   : > { %v4513_v25 = vpop.f32.mrf.mxu0 }
 0x169   : > { %2144 = vmatmul.bf16.vlgmr.msrb.gmra.mxu3 %v3266_v26  ;;  %v1451_v33 = vpop.f32.mrf.mxu2 }
 0x16a   : > { %v1452_v34 = vadd.f32 %v1451_v33, %v1403_v3 }
 0x16b   : > { %v1404_v37 = vpop.f32.mrf.mxu1 }
 0x16c   : > { %v1500_v36 = vpop.f32.mrf.mxu3  ;;  %v1405_v30 = vadd.f32 %v1404_v37, %v4451_v27  ;;  %v3298_v37 = vor.u32 %v3678_v15, %v3295_v18 }
 0x16d   : > { %v1501_v38 = vadd.f32 %v1500_v36, %v1452_v34  ;;  %v3294_v34 = vor.u32 %v3680_v52, %v3293_v12 }
 0x16e   : > { %2012 = vmatmul.bf16.gmra.mxu0 %v3302_v57  ;;  %v3682_v57 = vld [vmem:[%s3974_s9 + $0x14c] sm:$0xf] }
 0x16f   : > { %2201 = vrot.lane.b32.xlu0 %v1501_v38, %s3879_s25 }
 0x170   : > { %v4519_v31 = vpop.f32.mrf.mxu0 }
 0x171   : > { %v1453_v56 = vpop.f32.mrf.mxu2 }
 0x172   : > { %v1454_v42 = vadd.f32 %v1453_v56, %v1405_v30  ;;  %v3684_v56 = vld [vmem:[%s3974_s9 + $0x174] sm:$0xf0] }
 0x173   : > { %v1407_v63 = vpop.f32.mrf.mxu1 }
 0x174   : > { %v1502_v58 = vpop.f32.mrf.mxu3  ;;  %v1408_v27 = vadd.f32 %v1407_v63, %v4462_v45  ;;  %v3287_v45 = vld [vmem:[%s3974_s9 + $0x110] sm:$0xf0] }
 0x175   : > { %v1503_v4 = vadd.f32 %v1502_v58, %v1454_v42  ;;  %v3290_v33 = vor.u32 %v3677_v53, %v3287_v45  ;;  %v3311_v42 = vld [vmem:[%s3974_s9 + $0x178] sm:$0xf0] }
 0x176   : > { %2051 = vmatmul.bf16.gmra.mxu1 %v3274_v59  ;;  %2100 = vmatmul.bf16.gmra.mxu2 %v3278_v61  ;;  %v3333_v59 = vld [vmem:[%s3974_s9 + $0x200] sm:$0xf]  ;;  %v3691_v61 = vld [vmem:[%s3974_s9 + $0x22c] sm:$0xf0] }
 0x177   : > { %2203 = vrot.lane.b32.xlu0 %v1503_v4, %s3879_s25 }
 0x179   : > { %2149 = vmatmul.bf16.gmra.mxu3 %v3282_v0  ;;  %v1456_v6 = vpop.f32.mrf.mxu2  ;;  %v3334_v0 = vor.u32 %v3691_v61, %v3333_v59  ;;  %v3335_v59 = vld [vmem:[%s3974_s9 + $0x230] sm:$0xf0]  ;;  %v3341_v61 = vld [vmem:[%s3974_s9 + $0x208] sm:$0xf] }
 0x17a   : > { %v1457_v7 = vadd.f32 %v1456_v6, %v1408_v27 }
 0x17b   : > { %v1409_v9 = vpop.f32.mrf.mxu1 }
 0x17c   : > { %v1505_v8 = vpop.f32.mrf.mxu3  ;;  %v1410_v17 = vadd.f32 %v1409_v9, %v4469_v62 }
 0x17d   : > { %v1506_v10 = vadd.f32 %v1505_v8, %v1457_v7  ;;  %v3310_v7 = vor.u32 %v3684_v56, %v3309_v54  ;;  %v3314_v8 = vor.u32 %v3682_v57, %v3311_v42  ;;  %v3689_v42 = vld [vmem:[%s3974_s9 + $0x204] sm:$0xf] }
 0x17e   : > { %2017 = vmatmul.bf16.gmra.mxu0 %v3318_v24  ;;  %v3686_v24 = vld [vmem:[%s3974_s9 + $0x1ac] sm:$0xf] }
 0x17f   : > { %2205 = vrot.lane.b32.xlu2 %v1506_v10, %s3879_s25 }
 0x181   : > { %v1458_v23 = vpop.f32.mrf.mxu2 }
 0x182   : > { %v1459_v26 = vadd.f32 %v1458_v23, %v1410_v17  ;;  %v3325_v23 = vld [vmem:[%s3974_s9 + $0x1a8] sm:$0xf] }
 0x183   : > { %v1412_v36 = vpop.f32.mrf.mxu1 }
 0x184   : > { %v1507_v3 = vpop.f32.mrf.mxu3  ;;  %v1413_v62 = vadd.f32 %v1412_v36, %v4480_v13  ;;  %v3681_v13 = vld [vmem:[%s3974_s9 + $0x144] sm:$0xf] }
 0x185   : > { %v1508_v38 = vadd.f32 %v1507_v3, %v1459_v26  ;;  %v3306_v6 = vor.u32 %v3681_v13, %v3303_v50  ;;  %v3327_v26 = vld [vmem:[%s3974_s9 + $0x1d8] sm:$0xf0]  ;;  %v3349_v3 = vld [vmem:[%s3974_s9 + $0x260] sm:$0xf] }
 0x186   : > { %2056 = vmatmul.bf16.gmra.mxu1 %v3290_v33  ;;  %2105 = vmatmul.bf16.gmra.mxu2 %v3294_v34  ;;  %v3695_v33 = vld [vmem:[%s3974_s9 + $0x28c] sm:$0xf0] }
 0x187   : > { %2207 = vrot.lane.b32.xlu2 %v1508_v38, %s3879_s25 }
 0x189   : > { %2154 = vmatmul.bf16.gmra.mxu3 %v3298_v37  ;;  %v1461_v39 = vpop.f32.mrf.mxu2  ;;  %v3350_v37 = vor.u32 %v3695_v33, %v3349_v3  ;;  %v3693_v3 = vld [vmem:[%s3974_s9 + $0x264] sm:$0xf]  ;;  %v3351_v33 = vld [vmem:[%s3974_s9 + $0x290] sm:$0xf0] }
 0x18a   : > { %v1462_v11 = vadd.f32 %v1461_v39, %v1413_v62  ;;  %v3322_v39 = vor.u32 %v3685_v20, %v3319_v21 }
 0x18b   : > { %v1414_v43 = vpop.f32.mrf.mxu1  ;;  %v4529_v58 = vpop.f32.mrf.mxu0 }
 0x18c   : > { %v1510_v40 = vpop.f32.mrf.mxu3  ;;  %v1415_v46 = vadd.f32 %v1414_v43, %v4487_v29 }
 0x18d   : > { %v1511_v30 = vadd.f32 %v1510_v40, %v1462_v11 }
 0x18e   : > { %2022 = vmatmul.bf16.gmra.mxu0 %v3334_v0  ;;  %v3690_v0 = vld [vmem:[%s3974_s9 + $0x20c] sm:$0xf] }
 0x18f   : > { %2209 = vrot.lane.b32.xlu2 %v1511_v30, %s3879_s25 }
 0x191   : > { %v1463_v63 = vpop.f32.mrf.mxu2 }
 0x192   : > { %v1464_v4 = vadd.f32 %v1463_v63, %v1415_v46  ;;  %v3692_v63 = vld [vmem:[%s3974_s9 + $0x234] sm:$0xf0] }
 0x193   : > { %v1417_v29 = vpop.f32.mrf.mxu1  ;;  %v4536_v53 = vpop.f32.mrf.mxu0 }
 0x194   : > { %v1512_v27 = vpop.f32.mrf.mxu3  ;;  %v1418_v10 = vadd.f32 %v1417_v29, %v4497_v48  ;;  %v3688_v48 = vld [vmem:[%s3974_s9 + $0x1d4] sm:$0xf0] }
 0x195   : > { %v4533_v9 = vadd.f32 %v1512_v27, %v1464_v4  ;;  %v3326_v11 = vor.u32 %v3688_v48, %v3325_v23  ;;  %v3343_v4 = vld [vmem:[%s3974_s9 + $0x238] sm:$0xf0]  ;;  %v3365_v27 = vld [vmem:[%s3974_s9 + $0x2c0] sm:$0xf] }
 0x196   : > { %2061 = vmatmul.bf16.gmra.mxu1 %v3306_v6  ;;  %2110 = vmatmul.bf16.gmra.mxu2 %v3310_v7  ;;  %v3699_v6 = vld [vmem:[%s3974_s9 + $0x2ec] sm:$0xf0] }
 0x197   : > { %v3366_v29 = vor.u32 %v3699_v6, %v3365_v27  ;;  %v3367_v27 = vld [vmem:[%s3974_s9 + $0x2f0] sm:$0xf0]  ;;  %v3373_v6 = vld [vmem:[%s3974_s9 + $0x2c8] sm:$0xf] }
 0x199   : > { %2159 = vmatmul.bf16.gmra.mxu3 %v3314_v8  ;;  %v1466_v45 = vpop.f32.mrf.mxu2 }
 0x19a   : > { %v1467_v12 = vadd.f32 %v1466_v45, %v1418_v10  ;;  %v3338_v45 = vor.u32 %v3689_v42, %v3335_v59 }
 0x19b   : > { %v1419_v15 = vpop.f32.mrf.mxu1  ;;  %v4549_v36 = vpop.f32.mrf.mxu0 }
 0x19c   : > { %v1515_v52 = vpop.f32.mrf.mxu3  ;;  %v1420_v18 = vadd.f32 %v1419_v15, %v4503_v51  ;;  %v3330_v51 = vor.u32 %v3686_v24, %v3327_v26  ;;  %v3346_v15 = vor.u32 %v3690_v0, %v3343_v4  ;;  %v3697_v4 = vld [vmem:[%s3974_s9 + $0x2c4] sm:$0xf] }
 0x19d   : > { %v4538_v17 = vadd.f32 %v1515_v52, %v1467_v12  ;;  %v3342_v12 = vor.u32 %v3692_v63, %v3341_v61 }
 0x19e   : > { %2027 = vmatmul.bf16.gmra.mxu0 %v3350_v37  ;;  %v3696_v37 = vld [vmem:[%s3974_s9 + $0x294] sm:$0xf0] }
 0x1a1   : > { %v1468_v34 = vpop.f32.mrf.mxu2 }
 0x1a2   : > { %v1469_v38 = vadd.f32 %v1468_v34, %v1420_v18  ;;  %v3357_v34 = vld [vmem:[%s3974_s9 + $0x268] sm:$0xf] }
 0x1a3   : > { %v1422_v40 = vpop.f32.mrf.mxu1  ;;  %v1385_v56 = vpop.f32.mrf.mxu0 }
 0x1a4   : > { %v1517_v62 = vpop.f32.mrf.mxu3  ;;  %v1423_v30 = vadd.f32 %v1422_v40, %v4513_v25 }
 0x1a5   : > { %v4551_v43 = vadd.f32 %v1517_v62, %v1469_v38 }
 0x1a6   : > { %2066 = vmatmul.bf16.gmra.mxu1 %v3322_v39  ;;  %2115 = vmatmul.bf16.gmra.mxu2 %v3326_v11  ;;  %v3359_v39 = vld [vmem:[%s3974_s9 + $0x298] sm:$0xf0] }
 0x1a9   : > { %2164 = vmatmul.bf16.gmra.mxu3 %v3330_v51  ;;  %v1471_v46 = vpop.f32.mrf.mxu2 }
 0x1aa   : > { %v1472_v13 = vadd.f32 %v1471_v46, %v1423_v30  ;;  %v3354_v30 = vor.u32 %v3693_v3, %v3351_v33  ;;  %v3358_v46 = vor.u32 %v3696_v37, %v3357_v34 }
 0x1ab   : > { %v1424_v54 = vpop.f32.mrf.mxu1  ;;  %v1388_v20 = vpop.f32.mrf.mxu0 }
 0x1ac   : > { %v1520_v50 = vpop.f32.mrf.mxu3  ;;  %v1425_v25 = vadd.f32 %v1424_v54, %v4519_v31 }
 0x1ad   : > { %v4554_v57 = vadd.f32 %v1520_v50, %v1472_v13 }
 0x1ae   : > { %2032 = vmatmul.bf16.gmra.mxu0 %v3366_v29 }
 0x1b1   : > { %v1473_v7 = vpop.f32.mrf.mxu2 }
 0x1b2   : > { %v1474_v8 = vadd.f32 %v1473_v7, %v1425_v25  ;;  %v3700_v7 = vld [vmem:[%s3974_s9 + $0x2f4] sm:$0xf0] }
 0x1b3   : > { %v1427_v52 = vpop.f32.mrf.mxu1  ;;  %v1390_v38 = vpop.f32.mrf.mxu0 }
 0x1b4   : > { %v1522_v10 = vpop.f32.mrf.mxu3  ;;  %v1428_v31 = vadd.f32 %v1427_v52, %v4529_v58  ;;  %v3694_v58 = vld [vmem:[%s3974_s9 + $0x26c] sm:$0xf] }
 0x1b5   : > { %v4565_v18 = vadd.f32 %v1522_v10, %v1474_v8  ;;  %v3362_v50 = vor.u32 %v3694_v58, %v3359_v39  ;;  %v3698_v8 = vld [vmem:[%s3974_s9 + $0x2cc] sm:$0xf]  ;;  %v3375_v10 = vld [vmem:[%s3974_s9 + $0x2f8] sm:$0xf0]  ;;  %s4735_s9 = scalar_lea.vmem %s4787_s5, %s2610_s18 }
 0x1b6   : > { %2071 = vmatmul.bf16.gmra.mxu1 %v3338_v45  ;;  %2120 = vmatmul.bf16.gmra.mxu2 %v3342_v12 }
 0x1b9   : > { %2169 = vmatmul.bf16.gmra.mxu3 %v3346_v15  ;;  %v1476_v21 = vpop.f32.mrf.mxu2  ;;  %v3370_v15 = vor.u32 %v3697_v4, %v3367_v27 }
 0x1ba   : > { %v1477_v23 = vadd.f32 %v1476_v21, %v1428_v31  ;;  %v3374_v31 = vor.u32 %v3700_v7, %v3373_v6 }
 0x1bb   : > { %v1429_v24 = vpop.f32.mrf.mxu1  ;;  %v1998_v59 = vpop.f32.mrf.mxu0 }
 0x1bc   : > { %v1525_v48 = vpop.f32.mrf.mxu3  ;;  %v1430_v62 = vadd.f32 %v1429_v24, %v4536_v53 }
 0x1bd   : > { %v4568_v26 = vadd.f32 %v1525_v48, %v1477_v23  ;;  %v3378_v23 = vor.u32 %v3698_v8, %v3375_v10 }
 0x1c1   : > { %v1478_v11 = vpop.f32.mrf.mxu2 }
 0x1c2   : > { %v1479_v40 = vadd.f32 %v1478_v11, %v1430_v62 }
 0x1c3   : > { %v1432_v13 = vpop.f32.mrf.mxu1  ;;  %v2000_v48 = vpop.f32.mrf.mxu0 }
 0x1c4   : > { %v1527_v51 = vpop.f32.mrf.mxu3  ;;  %v1433_v42 = vadd.f32 %v1432_v13, %v4549_v36  ;;  %v3738_v36 = vld [vmem:[%s4785_s3 + $0x28] sm:$0xff] }
 0x1c5   : > { %v4577_v54 = vadd.f32 %v1527_v51, %v1479_v40  ;;  %2470 = vmatpush.bf16.msrb.mxu0 %v3738_v36 }
 0x1c6   : > { %2076 = vmatmul.bf16.gmra.mxu1 %v3354_v30  ;;  %2125 = vmatmul.bf16.gmra.mxu2 %v3358_v46 }
 0x1c9   : > { %2174 = vmatmul.bf16.gmra.mxu3 %v3362_v50  ;;  %v1481_v53 = vpop.f32.mrf.mxu2 }
 0x1ca   : > { %v1482_v61 = vadd.f32 %v1481_v53, %v1433_v42 }
 0x1cb   : > { %v1434_v0 = vpop.f32.mrf.mxu1  ;;  %v2003_v58 = vpop.f32.mrf.mxu0 }
 0x1cc   : > { %v1530_v63 = vpop.f32.mrf.mxu3  ;;  %v1435_v29 = vadd.f32 %v1434_v0, %v1385_v56 }
 0x1cd   : > { %v4580_v25 = vadd.f32 %v1530_v63, %v1482_v61 }
 0x1d1   : > { %v1483_v45 = vpop.f32.mrf.mxu2 }
 0x1d2   : > { %v1484_v12 = vadd.f32 %v1483_v45, %v1435_v29 }
 0x1d3   : > { %v1437_v21 = vpop.f32.mrf.mxu1  ;;  %v2005_v50 = vpop.f32.mrf.mxu0 }
 0x1d4   : > { %v1532_v52 = vpop.f32.mrf.mxu3  ;;  %v1438_v3 = vadd.f32 %v1437_v21, %v1388_v20  ;;  %v3737_v20 = vld [vmem:[%s4785_s3 + $0x20] sm:$0xff] }
 0x1d5   : > { %v4591_v24 = vadd.f32 %v1532_v52, %v1484_v12  ;;  %2471 = vmatpush.bf16.msrb.mxu0 %v3737_v20  ;;  %v3735_v20 = vld [vmem:[%s4785_s3 + $0x10] sm:$0xff] }
 0x1d6   : > { %2081 = vmatmul.bf16.gmra.mxu1 %v3370_v15  ;;  %2130 = vmatmul.bf16.gmra.mxu2 %v3374_v31  ;;  %v3736_v31 = vld [vmem:[%s4785_s3 + $0x18] sm:$0xff] }
 0x1d9   : > { %2179 = vmatmul.bf16.gmra.mxu3 %v3378_v23  ;;  %v1486_v33 = vpop.f32.mrf.mxu2  ;;  %2472 = vmatpush.bf16.msrb.mxu0 %v3736_v31 }
 0x1da   : > { %v1487_v34 = vadd.f32 %v1486_v33, %v1438_v3 }
 0x1db   : > { %v1439_v37 = vpop.f32.mrf.mxu1  ;;  %v2008_v4 = vpop.f32.mrf.mxu0 }
 0x1dc   : > { %v1535_v56 = vpop.f32.mrf.mxu3  ;;  %v1440_v39 = vadd.f32 %v1439_v37, %v1390_v38 }
 0x1dd   : > { %v4593_v62 = vadd.f32 %v1535_v56, %v1487_v34  ;;  %2473 = vmatpush.bf16.msrb.mxu0 %v3735_v20 }
 0x1e1   : > { %v1488_v11 = vpop.f32.mrf.mxu2 }
 0x1e2   : > { %v1489_v40 = vadd.f32 %v1488_v11, %v1440_v39 }
 0x1e3   : > { %v2047_v30 = vpop.f32.mrf.mxu1  ;;  %v2010_v52 = vpop.f32.mrf.mxu0 }
 0x1e4   : > { %v1537_v51 = vpop.f32.mrf.mxu3  ;;  %v2048_v13 = vadd.f32 %v2047_v30, %v1998_v59 }
 0x1e5   : > { %v4595_v46 = vadd.f32 %v1537_v51, %v1489_v40 }
 0x1e9   : > { %v2096_v42 = vpop.f32.mrf.mxu2 }
 0x1ea   : > { %v2097_v61 = vadd.f32 %v2096_v42, %v2048_v13 }
 0x1eb   : > { %v2049_v63 = vpop.f32.mrf.mxu1  ;;  %v2013_v56 = vpop.f32.mrf.mxu0 }
 0x1ec   : > { %v2145_v53 = vpop.f32.mrf.mxu3  ;;  %v2050_v38 = vadd.f32 %v2049_v63, %v2000_v48 }
 0x1ed   : > { %v2146_v0 = vadd.f32 %v2145_v53, %v2097_v61 }
 0x1ef   : > { %2265 = vrot.lane.b32.xlu1 %v2146_v0, %s3880_s7 }
 0x1f1   : > { %v2098_v27 = vpop.f32.mrf.mxu2 }
 0x1f2   : > { %v2099_v7 = vadd.f32 %v2098_v27, %v2050_v38 }
 0x1f3   : > { %v2052_v36 = vpop.f32.mrf.mxu1  ;;  %v2015_v30 = vpop.f32.mrf.mxu0 }
 0x1f4   : > { %v2147_v6 = vpop.f32.mrf.mxu3  ;;  %v2053_v8 = vadd.f32 %v2052_v36, %v2003_v58 }
 0x1f5   : > { %v2148_v29 = vadd.f32 %v2147_v6, %v2099_v7 }
 0x1f7   : > { %2267 = vrot.lane.b32.xlu1 %v2148_v29, %s3880_s7 }
 0x1f9   : > { %v2101_v59 = vpop.f32.mrf.mxu2 }
 0x1fa   : > { %v2102_v45 = vadd.f32 %v2101_v59, %v2053_v8 }
 0x1fb   : > { %v2054_v12 = vpop.f32.mrf.mxu1  ;;  %v2018_v0 = vpop.f32.mrf.mxu0 }
 0x1fc   : > { %v2150_v10 = vpop.f32.mrf.mxu3  ;;  %v2055_v21 = vadd.f32 %v2054_v12, %v2005_v50 }
 0x1fd   : > { %v2151_v15 = vadd.f32 %v2150_v10, %v2102_v45  ;;  %v3734_v45 = vld [vmem:[%s4785_s3 + $0x8] sm:$0xff] }
 0x1fe   : > { %2474 = vmatpush.bf16.msrb.mxu0 %v3734_v45 }
 0x1ff   : > { %2269 = vrot.lane.b32.xlu0 %v2151_v15, %s3880_s7 }
 0x201   : > { %v2103_v23 = vpop.f32.mrf.mxu2 }
 0x202   : > { %v2104_v3 = vadd.f32 %v2103_v23, %v2055_v21 }
 0x203   : > { %v2057_v33 = vpop.f32.mrf.mxu1  ;;  %v2020_v10 = vpop.f32.mrf.mxu0 }
 0x204   : > { %v2152_v48 = vpop.f32.mrf.mxu3  ;;  %v2058_v37 = vadd.f32 %v2057_v33, %v2008_v4 }
 0x205   : > { %v2153_v34 = vadd.f32 %v2152_v48, %v2104_v3 }
 0x207   : > { %2271 = vrot.lane.b32.xlu1 %v2153_v34, %s3880_s7  ;;  %2211 = vrot.lane.b32.xlu0 %v4533_v9, %s3879_s25 }
 0x209   : > { %v2106_v58 = vpop.f32.mrf.mxu2 }
 0x20a   : > { %v2107_v11 = vadd.f32 %v2106_v58, %v2058_v37 }
 0x20b   : > { %v2059_v40 = vpop.f32.mrf.mxu1  ;;  %v2023_v23 = vpop.f32.mrf.mxu0 }
 0x20c   : > { %v2155_v39 = vpop.f32.mrf.mxu3  ;;  %v2060_v13 = vadd.f32 %v2059_v40, %v2010_v52 }
 0x20d   : > { %v2156_v51 = vadd.f32 %v2155_v39, %v2107_v11 }
 0x20f   : > { %2273 = vrot.lane.b32.xlu1 %v2156_v51, %s3880_s7  ;;  %2213 = vrot.lane.b32.xlu0 %v4538_v17, %s3879_s25 }
 0x211   : > { %v2108_v50 = vpop.f32.mrf.mxu2 }
 0x212   : > { %v2109_v9 = vadd.f32 %v2108_v50, %v2060_v13 }
 0x213   : > { %v2062_v53 = vpop.f32.mrf.mxu1  ;;  %v2025_v58 = vpop.f32.mrf.mxu0 }
 0x214   : > { %v2157_v42 = vpop.f32.mrf.mxu3  ;;  %v2063_v63 = vadd.f32 %v2062_v53, %v2013_v56 }
 0x215   : > { %v2158_v61 = vadd.f32 %v2157_v42, %v2109_v9 }
 0x217   : > { %2215 = vrot.lane.b32.xlu1 %v4551_v43, %s3879_s25  ;;  %2275 = vrot.lane.b32.xlu2 %v2158_v61, %s3880_s7 }
 0x219   : > { %v2111_v17 = vpop.f32.mrf.mxu2 }
 0x21a   : > { %v2112_v4 = vadd.f32 %v2111_v17, %v2063_v63 }
 0x21b   : > { %v2064_v27 = vpop.f32.mrf.mxu1  ;;  %v2028_v13 = vpop.f32.mrf.mxu0 }
 0x21c   : > { %v2160_v38 = vpop.f32.mrf.mxu3  ;;  %v2065_v7 = vadd.f32 %v2064_v27, %v2015_v30  ;;  %v3733_v30 = vld [vmem:[%s4785_s3] sm:$0xff] }
 0x21d   : > { %v2161_v6 = vadd.f32 %v2160_v38, %v2112_v4  ;;  %2475 = vmatpush.bf16.msrb.mxu0 %v3733_v30 }
 0x21f   : > { %2217 = vrot.lane.b32.xlu1 %v4554_v57, %s3879_s25  ;;  %2277 = vrot.lane.b32.xlu2 %v2161_v6, %s3880_s7 }
 0x221   : > { %v2113_v36 = vpop.f32.mrf.mxu2 }
 0x222   : > { %v2114_v8 = vadd.f32 %v2113_v36, %v2065_v7 }
 0x223   : > { %v2067_v59 = vpop.f32.mrf.mxu1  ;;  %v2030_v4 = vpop.f32.mrf.mxu0 }
 0x224   : > { %v2162_v29 = vpop.f32.mrf.mxu3  ;;  %v2068_v12 = vadd.f32 %v2067_v59, %v2018_v0 }
 0x225   : > { %v2163_v43 = vadd.f32 %v2162_v29, %v2114_v8 }
 0x227   : > { %2219 = vrot.lane.b32.xlu2 %v4565_v18, %s3879_s25  ;;  %2279 = vrot.lane.b32.xlu0 %v2163_v43, %s3880_s7 }
 0x229   : > { %v2116_v57 = vpop.f32.mrf.mxu2 }
 0x22a   : > { %v2117_v15 = vadd.f32 %v2116_v57, %v2068_v12  ;;  %v2202_v12 = vpop.permute.xlu0 %2201 }
 0x22b   : > { %v2069_v31 = vpop.f32.mrf.mxu1 }
 0x22c   : > { %v2165_v52 = vpop.f32.mrf.mxu3  ;;  %v2070_v48 = vadd.f32 %v2069_v31, %v2020_v10 }
 0x22d   : > { %v2166_v21 = vadd.f32 %v2165_v52, %v2117_v15  ;;  %v2206_v15 = vpop.permute.xlu2 %2205 }
 0x22f   : > { %2221 = vrot.lane.b32.xlu2 %v4568_v26, %s3879_s25  ;;  %2281 = vrot.lane.b32.xlu0 %v2166_v21, %s3880_s7 }
 0x231   : > { %v2118_v3 = vpop.f32.mrf.mxu2 }
 0x232   : > { %v2119_v34 = vadd.f32 %v2118_v3, %v2070_v48 }
 0x233   : > { %v2072_v56 = vpop.f32.mrf.mxu1 }
 0x234   : > { %v2167_v33 = vpop.f32.mrf.mxu3  ;;  %v2073_v37 = vadd.f32 %v2072_v56, %v2023_v23  ;;  %v2204_v56 = vpop.permute.xlu0 %2203 }
 0x235   : > { %v2168_v18 = vadd.f32 %v2167_v33, %v2119_v34  ;;  %v4654_v33 = vld [vmem:[%s4784_s2] ss:$0 sm:$0xff] }
 0x237   : > { %2283 = vrot.lane.b32.xlu1 %v2168_v18, %s3880_s7  ;;  %2223 = vrot.lane.b32.xlu0 %v4577_v54, %s3879_s25 }
 0x239   : > { %v2121_v39 = vpop.f32.mrf.mxu2 }
 0x23a   : > { %v2122_v40 = vadd.f32 %v2121_v39, %v2073_v37  ;;  %v2315_v37 = vsel %vm2313_vm1, %v4318_v41, %v2204_v56 }
 0x23b   : > { %v2074_v51 = vpop.f32.mrf.mxu1 }
 0x23c   : > { %v2170_v11 = vpop.f32.mrf.mxu3  ;;  %v2075_v20 = vadd.f32 %v2074_v51, %v2025_v58 }
 0x23d   : > { %v2171_v26 = vadd.f32 %v2170_v11, %v2122_v40 }
 0x23f   : > { %2285 = vrot.lane.b32.xlu1 %v2171_v26, %s3880_s7  ;;  %2225 = vrot.lane.b32.xlu0 %v4580_v25, %s3879_s25 }
 0x241   : > { %v2123_v50 = vpop.f32.mrf.mxu2 }
 0x242   : > { %v2124_v42 = vadd.f32 %v2123_v50, %v2075_v20 }
 0x243   : > { %v2077_v9 = vpop.f32.mrf.mxu1 }
 0x244   : > { %v2172_v54 = vpop.f32.mrf.mxu3  ;;  %v2078_v61 = vadd.f32 %v2077_v9, %v2028_v13  ;;  %v2316_v13 = vsel %vm2313_vm1, %v4326_v55, %v2206_v15 }
 0x245   : > { %v2173_v53 = vadd.f32 %v2172_v54, %v2124_v42 }
 0x247   : > { %2227 = vrot.lane.b32.xlu1 %v4591_v24, %s3879_s25  ;;  %2287 = vrot.lane.b32.xlu2 %v2173_v53, %s3880_s7  ;;  %v2033_v24 = vpop.f32.mrf.mxu0 }
 0x249   : > { %v2126_v63 = vpop.f32.mrf.mxu2 }
 0x24a   : > { %v2127_v17 = vadd.f32 %v2126_v63, %v2078_v61 }
 0x24b   : > { %v2079_v38 = vpop.f32.mrf.mxu1 }
 0x24c   : > { %v2175_v0 = vpop.f32.mrf.mxu3  ;;  %v2080_v27 = vadd.f32 %v2079_v38, %v2030_v4 }
 0x24d   : > { %v2176_v25 = vadd.f32 %v2175_v0, %v2127_v17 }
 0x24f   : > { %2229 = vrot.lane.b32.xlu1 %v4593_v62, %s3879_s25  ;;  %2289 = vrot.lane.b32.xlu2 %v2176_v25, %s3880_s7  ;;  %v2035_v52 = vpop.f32.mrf.mxu0 }
 0x251   : > { %v2128_v6 = vpop.f32.mrf.mxu2 }
 0x252   : > { %v2129_v36 = vadd.f32 %v2128_v6, %v2080_v27 }
 0x253   : > { %v2082_v29 = vpop.f32.mrf.mxu1 }
 0x254   : > { %v2177_v7 = vpop.f32.mrf.mxu3  ;;  %v2083_v59 = vadd.f32 %v2082_v29, %v2033_v24 }
 0x255   : > { %v2178_v8 = vadd.f32 %v2177_v7, %v2129_v36 }
 0x257   : > { %2231 = vrot.lane.b32.xlu2 %v4595_v46, %s3879_s25  ;;  %2291 = vrot.lane.b32.xlu0 %v2178_v8, %s3880_s7  ;;  %v2314_v46 = vsel %vm2313_vm1, %v4302_v16, %v2202_v12  ;;  %v2208_v16 = vpop.permute.xlu2 %2207 }
 0x258   : > { %v2317_v54 = vsel %vm2313_vm1, %v4342_v14, %v2208_v16 }
 0x259   : > { %v2131_v10 = vpop.f32.mrf.mxu2 }
 0x25a   : > { %v2132_v45 = vadd.f32 %v2131_v10, %v2083_v59 }
 0x25b   : > { %v2084_v57 = vpop.f32.mrf.mxu1 }
 0x25c   : > { %v2180_v43 = vpop.f32.mrf.mxu3  ;;  %v2085_v31 = vadd.f32 %v2084_v57, %v2035_v52 }
 0x25d   : > { %v2181_v62 = vadd.f32 %v2180_v43, %v2132_v45 }
 0x25f   : > { %2293 = vrot.lane.b32.xlu0 %v2181_v62, %s3880_s7  ;;  %v2210_v50 = vpop.permute.xlu2 %2209 }
 0x260   : > { %v2318_v14 = vsel %vm2313_vm1, %v4351_v22, %v2210_v50 }
 0x261   : > { %v2266_v21 = vpop.permute.xlu1 %2265  ;;  %v2133_v23 = vpop.f32.mrf.mxu2 }
 0x262   : > { %v2134_v48 = vadd.f32 %v2133_v23, %v2085_v31  ;;  %v2331_v18 = vsel %vm2330_vm0, %v2314_v46, %v2266_v21 }
 0x263   : > { %v2351_v58 = vadd.f32 %v4654_v33, %v2331_v18 }
 0x264   : > { %v2182_v3 = vpop.f32.mrf.mxu3 }
 0x265   : > { %v2183_v34 = vadd.f32 %v2182_v3, %v2134_v48  ;;  %v2367_v51 = vmax.f32 %v2351_v58, 0.0 }
 0x267   : > { %2295 = vrot.lane.b32.xlu1 %v2183_v34, %s3880_s7 }
 0x269   : > { %v2268_v39 = vpop.permute.xlu1 %2267 }
 0x26a   : > { %v2332_v11 = vsel %vm2330_vm0, %v2315_v37, %v2268_v39 }
 0x26b   : > { %v2352_v40 = vadd.f32 %v4654_v33, %v2332_v11 }
 0x26d   : > { %v2368_v26 = vmax.f32 %v2352_v40, 0.0 }
 0x26f   : > { %v2383_v30 = vpack.c.bf16 %v2368_v26, %v2367_v51 }
 0x271   : > { %v2270_v20 = vpop.permute.xlu0 %2269  ;;  %3531 = vmatmul.msk.bf16.vlgmr.msrb.gmra.mxu0 %vm2443_vm2, %v2383_v30  ;;  %v2276_v17 = vpop.permute.xlu2 %2275 }
 0x272   : > { %v2333_v41 = vsel %vm2330_vm0, %v2316_v13, %v2270_v20 }
 0x273   : > { %v2353_v42 = vadd.f32 %v4654_v33, %v2333_v41 }
 0x275   : > { %v2369_v38 = vmax.f32 %v2353_v42, 0.0 }
 0x279   : > { %v2272_v9 = vpop.permute.xlu1 %2271  ;;  %v2212_v61 = vpop.permute.xlu0 %2211 }
 0x27a   : > { %v2334_v53 = vsel %vm2330_vm0, %v2317_v54, %v2272_v9  ;;  %v2319_v0 = vsel %vm2313_vm1, %v4368_v49, %v2212_v61  ;;  %v2278_v59 = vpop.permute.xlu2 %2277 }
 0x27b   : > { %v2354_v63 = vadd.f32 %v4654_v33, %v2334_v53  ;;  %v2336_v4 = vsel %vm2330_vm0, %v2319_v0, %v2276_v17 }
 0x27c   : > { %v2356_v27 = vadd.f32 %v4654_v33, %v2336_v4 }
 0x27d   : > { %v2370_v55 = vmax.f32 %v2354_v63, 0.0 }
 0x27e   : > { %v2372_v29 = vmax.f32 %v2356_v27, 0.0 }
 0x27f   : > { %v2384_v25 = vpack.c.bf16 %v2370_v55, %v2369_v38 }
 0x281   : > { %v2274_v6 = vpop.permute.xlu1 %2273  ;;  %3532 = vmatmul.msk.bf16.gmra.mxu0 %vm2443_vm2, %v2384_v25  ;;  %v2214_v24 = vpop.permute.xlu0 %2213 }
 0x282   : > { %v2335_v7 = vsel %vm2330_vm0, %v2318_v14, %v2274_v6  ;;  %v2320_v10 = vsel %vm2313_vm1, %v4377_v60, %v2214_v24  ;;  %v2220_v52 = vpop.permute.xlu2 %2219 }
 0x283   : > { %v2355_v36 = vadd.f32 %v4654_v33, %v2335_v7  ;;  %v2337_v22 = vsel %vm2330_vm0, %v2320_v10, %v2278_v59 }
 0x284   : > { %v2357_v45 = vadd.f32 %v4654_v33, %v2337_v22 }
 0x285   : > { %v2371_v49 = vmax.f32 %v2355_v36, 0.0 }
 0x286   : > { %v2373_v31 = vmax.f32 %v2357_v45, 0.0 }
 0x287   : > { %v2385_v8 = vpack.c.bf16 %v2372_v29, %v2371_v49 }
 0x289   : > { %v2216_v43 = vpop.permute.xlu1 %2215 }
 0x28a   : > { %v2321_v12 = vsel %vm2313_vm1, %v4394_v19, %v2216_v43  ;;  %v2222_v60 = vpop.permute.xlu2 %2221  ;;  %v2323_v19 = vsel %vm2313_vm1, %v4420_v47, %v2220_v52 }
 0x28b   : > { %v2324_v47 = vsel %vm2313_vm1, %v4429_v2, %v2222_v60 }
 0x291   : > { %3533 = vmatmul.msk.bf16.gmra.mxu0 %vm2443_vm2, %v2385_v8  ;;  %v2218_v48 = vpop.permute.xlu1 %2217 }
 0x292   : > { %v2322_v46 = vsel %vm2313_vm1, %v4403_v28, %v2218_v48 }
 0x299   : > { %v2280_v62 = vpop.permute.xlu0 %2279 }
 0x29a   : > { %v2338_v57 = vsel %vm2330_vm0, %v2321_v12, %v2280_v62 }
 0x29b   : > { %v2358_v15 = vadd.f32 %v4654_v33, %v2338_v57 }
 0x29d   : > { %v2374_v21 = vmax.f32 %v2358_v15, 0.0 }
 0x29f   : > { %v2386_v23 = vpack.c.bf16 %v2374_v21, %v2373_v31 }
 0x2a1   : > { %v2282_v3 = vpop.permute.xlu0 %2281  ;;  %3534 = vmatmul.msk.bf16.gmra.mxu0 %vm2443_vm2, %v2386_v23  ;;  %v2288_v16 = vpop.permute.xlu2 %2287 }
 0x2a2   : > { %v2339_v34 = vsel %vm2330_vm0, %v2322_v46, %v2282_v3 }
 0x2a3   : > { %v2359_v56 = vadd.f32 %v4654_v33, %v2339_v34 }
 0x2a5   : > { %v2375_v40 = vmax.f32 %v2359_v56, 0.0 }
 0x2a9   : > { %v2284_v18 = vpop.permute.xlu1 %2283  ;;  %v2224_v58 = vpop.permute.xlu0 %2223 }
 0x2aa   : > { %v2340_v37 = vsel %vm2330_vm0, %v2323_v19, %v2284_v18  ;;  %v2325_v11 = vsel %vm2313_vm1, %v4448_v1, %v2224_v58  ;;  %v2290_v53 = vpop.permute.xlu2 %2289 }
 0x2ab   : > { %v2360_v39 = vadd.f32 %v4654_v33, %v2340_v37  ;;  %v2342_v28 = vsel %vm2330_vm0, %v2325_v11, %v2288_v16 }
 0x2ac   : > { %v2362_v30 = vadd.f32 %v4654_v33, %v2342_v28 }
 0x2ad   : > { %v2376_v51 = vmax.f32 %v2360_v39, 0.0 }
 0x2ae   : > { %v2378_v41 = vmax.f32 %v2362_v30, 0.0 }
 0x2af   : > { %v2387_v26 = vpack.c.bf16 %v2376_v51, %v2375_v40 }
 0x2b1   : > { %v2286_v20 = vpop.permute.xlu1 %2285  ;;  %3535 = vmatmul.msk.bf16.gmra.mxu0 %vm2443_vm2, %v2387_v26  ;;  %v2226_v42 = vpop.permute.xlu0 %2225 }
 0x2b2   : > { %v2341_v13 = vsel %vm2330_vm0, %v2324_v47, %v2286_v20  ;;  %v2326_v9 = vsel %vm2313_vm1, %v4453_v35, %v2226_v42  ;;  %v2232_v7 = vpop.permute.xlu2 %2231 }
 0x2b3   : > { %v2361_v50 = vadd.f32 %v4654_v33, %v2341_v13  ;;  %v2343_v2 = vsel %vm2330_vm0, %v2326_v9, %v2290_v53 }
 0x2b4   : > { %v2363_v63 = vadd.f32 %v4654_v33, %v2343_v2 }
 0x2b5   : > { %v2377_v1 = vmax.f32 %v2361_v50, 0.0 }
 0x2b6   : > { %v2379_v4 = vmax.f32 %v2363_v63, 0.0 }
 0x2b7   : > { %v2388_v54 = vpack.c.bf16 %v2378_v41, %v2377_v1 }
 0x2b9   : > { %v2228_v61 = vpop.permute.xlu1 %2227 }
 0x2ba   : > { %v2327_v0 = vsel %vm2313_vm1, %v4466_v44, %v2228_v61  ;;  %v2329_v44 = vsel %vm2313_vm1, %v4484_v32, %v2232_v7 }
 0x2c1   : > { %3536 = vmatmul.msk.bf16.gmra.mxu0 %vm2443_vm2, %v2388_v54  ;;  %v2230_v27 = vpop.permute.xlu1 %2229 }
 0x2c2   : > { %v2328_v6 = vsel %vm2313_vm1, %v4471_v5, %v2230_v27  ;;  %v3810_v5 = vld [vmem:[%s4786_s4] ss:$0 sm:$0xff] }
 0x2c9   : > { %v2292_v17 = vpop.permute.xlu0 %2291 }
 0x2ca   : > { %v2344_v38 = vsel %vm2330_vm0, %v2327_v0, %v2292_v17 }
 0x2cb   : > { %v2364_v55 = vadd.f32 %v4654_v33, %v2344_v38 }
 0x2cd   : > { %v2380_v25 = vmax.f32 %v2364_v55, 0.0 }
 0x2cf   : > { %v2389_v14 = vpack.c.bf16 %v2380_v25, %v2379_v4 }
 0x2d1   : > { %3537 = vmatmul.msk.bf16.gmra.mxu0 %vm2443_vm2, %v2389_v14  ;;  %v2294_v35 = vpop.permute.xlu0 %2293 }
 0x2d2   : > { %v2345_v36 = vsel %vm2330_vm0, %v2328_v6, %v2294_v35 }
 0x2d3   : > { %v2365_v29 = vadd.f32 %v4654_v33, %v2345_v36 }
 0x2d5   : > { %v2381_v59 = vmax.f32 %v2365_v29, 0.0 }
 0x2d9   : > { %v2296_v49 = vpop.permute.xlu1 %2295 }
 0x2da   : > { %v2346_v8 = vsel %vm2330_vm0, %v2329_v44, %v2296_v49 }
 0x2db   : > { %v2366_v24 = vadd.f32 %v4654_v33, %v2346_v8 }
 0x2dd   : > { %v2382_v10 = vmax.f32 %v2366_v24, 0.0 }
 0x2df   : > { %v2390_v22 = vpack.c.bf16 %v2382_v10, %v2381_v59 }
 0x2e1   : > { %3538 = vmatmul.msk.bf16.gmra.mxu0 %vm2443_vm2, %v2390_v22 }
 0x2ee   : > { %v2477_v32 = vpop.f32.mrf.mxu0 }
 0x2ef   : > { %v2478_v33 = vadd.f32 %v3810_v5, %v2477_v32 }
 0x2f1   : > { %2518 = vst.msk [vmem:[%s4735_s9] sm:$0xff] %vm2517_vm3, %v2478_v33 }
 0x2f6   : > { %v2479_v43 = vpop.f32.mrf.mxu0 }
 0x2f7   : > { %v2480_v45 = vadd.f32 %v3810_v5, %v2479_v43 }
 0x2f9   : > { %2519 = vst.msk [vmem:[%s4735_s9 + $0x8] sm:$0xff] %vm2517_vm3, %v2480_v45 }
 0x2fe   : > { %v2482_v12 = vpop.f32.mrf.mxu0 }
 0x2ff   : > { %v2483_v62 = vadd.f32 %v3810_v5, %v2482_v12 }
 0x301   : > { %2520 = vst.msk [vmem:[%s4735_s9 + $0x10] sm:$0xff] %vm2517_vm3, %v2483_v62 }
 0x306   : > { %v2484_v57 = vpop.f32.mrf.mxu0 }
 0x307   : > { %v2485_v52 = vadd.f32 %v3810_v5, %v2484_v57 }
 0x309   : > { %2521 = vst.msk [vmem:[%s4735_s9 + $0x18] sm:$0xff] %vm2517_vm3, %v2485_v52 }
 0x30e   : > { %v2487_v15 = vpop.f32.mrf.mxu0 }
 0x30f   : > { %v2488_v31 = vadd.f32 %v3810_v5, %v2487_v15 }
 0x311   : > { %2522 = vst.msk [vmem:[%s4735_s9 + $0x20] sm:$0xff] %vm2517_vm3, %v2488_v31 }
 0x316   : > { %v2489_v21 = vpop.f32.mrf.mxu0 }
 0x317   : > { %v2490_v23 = vadd.f32 %v3810_v5, %v2489_v21 }
 0x319   : > { %2523 = vst.msk [vmem:[%s4735_s9 + $0x28] sm:$0xff] %vm2517_vm3, %v2490_v23 }
 0x31e   : > { %v2492_v48 = vpop.f32.mrf.mxu0 }
 0x31f   : > { %v2493_v3 = vadd.f32 %v3810_v5, %v2492_v48 }
 0x321   : > { %2524 = vst.msk [vmem:[%s4735_s9 + $0x30] sm:$0xff] %vm2517_vm3, %v2493_v3 }
 0x326   : > { %v2494_v60 = vpop.f32.mrf.mxu0 }
 0x327   : > { %v2495_v46 = vadd.f32 %v3810_v5, %v2494_v60 }
 0x329   : > { %2525 = vst.msk [vmem:[%s4735_s9 + $0x38] sm:$0xff] %vm2517_vm3, %v2495_v46 }
 0x32e   : > { %v2497_v34 = vpop.f32.mrf.mxu0 }
 0x32f   : > { %v2498_v19 = vadd.f32 %v3810_v5, %v2497_v34 }
 0x331   : > { %2526 = vst.msk [vmem:[%s4735_s9 + $0x40] sm:$0xff] %vm2517_vm3, %v2498_v19 }
 0x336   : > { %v2499_v56 = vpop.f32.mrf.mxu0 }
 0x337   : > { %v2500_v18 = vadd.f32 %v3810_v5, %v2499_v56 }
 0x339   : > { %2527 = vst.msk [vmem:[%s4735_s9 + $0x48] sm:$0xff] %vm2517_vm3, %v2500_v18 }
 0x33e   : > { %v2502_v37 = vpop.f32.mrf.mxu0 }
 0x33f   : > { %v2503_v58 = vadd.f32 %v3810_v5, %v2502_v37 }
 0x341   : > { %2528 = vst.msk [vmem:[%s4735_s9 + $0x50] sm:$0xff] %vm2517_vm3, %v2503_v58 }
 0x346   : > { %v2504_v39 = vpop.f32.mrf.mxu0 }
 0x347   : > { %v2505_v11 = vadd.f32 %v3810_v5, %v2504_v39 }
 0x349   : > { %2529 = vst.msk [vmem:[%s4735_s9 + $0x58] sm:$0xff] %vm2517_vm3, %v2505_v11 }
 0x34e   : > { %v2507_v16 = vpop.f32.mrf.mxu0 }
 0x34f   : > { %v2508_v40 = vadd.f32 %v3810_v5, %v2507_v16 }
 0x351   : > { %2530 = vst.msk [vmem:[%s4735_s9 + $0x60] sm:$0xff] %vm2517_vm3, %v2508_v40 }
 0x356   : > { %v2509_v51 = vpop.f32.mrf.mxu0 }
 0x357   : > { %v2510_v28 = vadd.f32 %v3810_v5, %v2509_v51 }
 0x359   : > { %2531 = vst.msk [vmem:[%s4735_s9 + $0x68] sm:$0xff] %vm2517_vm3, %v2510_v28 }
 0x35e   : > { %v2512_v26 = vpop.f32.mrf.mxu0 }
 0x35f   : > { %v2513_v47 = vadd.f32 %v3810_v5, %v2512_v26 }
 0x361   : > { %2532 = vst.msk [vmem:[%s4735_s9 + $0x70] sm:$0xff] %vm2517_vm3, %v2513_v47 }
 0x366   : > { %v2514_v30 = vpop.f32.mrf.mxu0 }
 0x367   : > { %v2515_v20 = vadd.f32 %v3810_v5, %v2514_v30 }
 0x369   : > { %2533 = vst.msk [vmem:[%s4735_s9 + $0x78] sm:$0xff] %vm2517_vm3, %v2515_v20 }
 0x36a PF: > { %p15_p7 = scmp.ge.s32.totalorder %s3931_s23, 4   ;;  %s4790_s18 = smov %s3867_s19 }
 0x36b   : > { %s4791_s19 = smov %s3871_s20  ;;  %s4792_s20 = smov %s3941_s26 }
 0x36c   : > { %s4793_s21 = smov %s3931_s23  ;;  %17 = sbr.rel (!%p15_p7) target bundleno = 3 (0x3), region = 82 }
 0x371   :  { %2556 = vsyncpa [#allocation3], 1 }
 0x372   :  { %2558 = vsyncpa [#allocation3 + $0x1], 1 }

</bundles_post_ra>
